<compile_context>
chip_gen: v5e
topology: v5e:2x2
jax: 0.10.0
libtpu: 0.0.40
codegen_flags: <defaults>
</compile_context>

<pallas_src>
import functools

import jax
import jax.numpy as jnp
from jax.experimental import pallas as pl
from jax.experimental.pallas import tpu as pltpu


_NCLS = 10     # classifier width
_NPAD = 128    # lane-dense padded logits width


# ----------------------- kernel 1: im2col + conv + ReLU --------------------- #

def _make_conv_kernel(tile_h, W, Cin, Cout):
    m_rows = tile_h * W

    def kernel(x_ref, w_ref, b_ref, o_ref):
        # x_ref: [1, H+2, W+2, Cin]  one padded NHWC image (resident across row tiles)
        # w_ref: [9, Cin, Cout]      tap-major weights, tap = kh*3 + kw
        # b_ref: [1, Cout]           (f32)
        # o_ref: [tile_h*W, Cout]    ReLU(conv) for this row tile, NHWC order
        s = pl.program_id(1)
        row0 = pl.multiple_of(s * tile_h, tile_h)
        band = x_ref[:, pl.ds(row0, tile_h + 2), :, :]     # [1, th+2, W+2, Cin]
        acc = None
        for dy in range(3):
            for dx in range(3):
                tap = band[:, dy:dy + tile_h, dx:dx + W, :]        # [1, th, W, Cin]
                tap2 = tap.reshape(m_rows, Cin)                    # collapse (th, W)
                part = jnp.dot(tap2, w_ref[dy * 3 + dx],
                               preferred_element_type=jnp.float32)
                acc = part if acc is None else acc + part
        acc = jnp.maximum(acc + b_ref[...], 0.0)                   # bias + ReLU in f32
        o_ref[...] = acc.astype(o_ref.dtype)

    return kernel


def _conv_relu(x_nchw, conv_w, conv_b, *, tile_h=None, operand_dtype=jnp.float32):
    B, Cin, H, W = x_nchw.shape
    Cout = conv_w.shape[0]
    if tile_h is None:
        tile_h = H
        while tile_h * W > 1024 and tile_h % 2 == 0:
            tile_h //= 2
    assert H % tile_h == 0, "tile_h must divide H"
    assert W % 8 == 0, "W must be a multiple of 8 (sublane tile)"
    ns = H // tile_h

    # NHWC + 1-pixel halo: the only wrapper-side data movement (1x input, not 9x).
    x_pad = jnp.pad(jnp.transpose(x_nchw, (0, 2, 3, 1)),
                    ((0, 0), (1, 1), (1, 1), (0, 0))).astype(operand_dtype)
    # Conv weights as [tap, Cin, Cout], tap = kh*3 + kw (matches in-kernel loop).
    w_taps = jnp.transpose(conv_w, (2, 3, 1, 0)).reshape(9, Cin, Cout).astype(operand_dtype)
    b_row = conv_b.reshape(1, Cout).astype(jnp.float32)

    itm = jnp.dtype(operand_dtype).itemsize
    flops = 2 * B * H * W * (9 * Cin) * Cout
    bytes_acc = (x_pad.size * itm + w_taps.size * itm + b_row.size * 4
                 + B * H * W * Cout * itm)

    conv_out = pl.pallas_call(
        _make_conv_kernel(tile_h, W, Cin, Cout),
        grid=(B, ns),
        in_specs=[
            pl.BlockSpec((1, H + 2, W + 2, Cin), lambda b, s: (b, 0, 0, 0)),
            pl.BlockSpec((9, Cin, Cout), lambda b, s: (0, 0, 0)),
            pl.BlockSpec((1, Cout), lambda b, s: (0, 0)),
        ],
        out_specs=pl.BlockSpec((tile_h * W, Cout), lambda b, s: (b * ns + s, 0)),
        out_shape=jax.ShapeDtypeStruct((B * H * W, Cout), operand_dtype),
        compiler_params=pltpu.CompilerParams(
            dimension_semantics=("parallel", "parallel"),
            vmem_limit_bytes=32 * 1024 * 1024),
        cost_estimate=pl.CostEstimate(flops=flops, transcendentals=0,
                                      bytes_accessed=bytes_acc),
    )(x_pad, w_taps, b_row)
    return conv_out          # [B*H*W, Cout], NHWC feature order


# ------------------- kernel 2: mu + classifier + log_softmax ---------------- #

def _head_kernel(feat_ref, wmu_ref, bmu_ref, wcls_ref, bcls_ref, o_ref):
    # feat: [tb, F], wmu: [F, hidden], bmu: [1, hidden]
    # wcls: [hidden, 128] (cols >= 10 are zero), bcls: [1, 128] (cols >= 10 = -1e30)
    h = jnp.dot(feat_ref[...], wmu_ref[...], preferred_element_type=jnp.float32)
    h = h + bmu_ref[...]
    logits = jnp.dot(h, wcls_ref[...], preferred_element_type=jnp.float32)
    logits = logits + bcls_ref[...]
    m = jnp.max(logits, axis=-1, keepdims=True)
    shifted = logits - m
    lse = jnp.log(jnp.sum(jnp.exp(shifted), axis=-1, keepdims=True))
    o_ref[...] = shifted - lse          # padded cols are ~-1e30; sliced off outside


def _head(feat, mu_w_perm, mu_b, cls_w, cls_b, *, tile_rows=None):
    B, F = feat.shape
    hidden = mu_w_perm.shape[1]
    if tile_rows is None:
        tile_rows = B if (B <= 256 or B % 256) else 256
    assert B % tile_rows == 0

    bmu = mu_b.reshape(1, hidden).astype(jnp.float32)
    wcls = jnp.zeros((hidden, _NPAD), jnp.float32).at[:, :_NCLS].set(cls_w.T)
    bcls = jnp.full((1, _NPAD), -1e30, jnp.float32).at[0, :_NCLS].set(cls_b)

    flops = 2 * B * F * hidden + 2 * B * hidden * _NPAD
    bytes_acc = (feat.size * feat.dtype.itemsize
                 + mu_w_perm.size * mu_w_perm.dtype.itemsize
                 + (bmu.size + wcls.size + bcls.size) * 4 + B * _NPAD * 4)

    out = pl.pallas_call(
        _head_kernel,
        grid=(B // tile_rows,),
        in_specs=[
            pl.BlockSpec((tile_rows, F), lambda i: (i, 0)),
            pl.BlockSpec((F, hidden), lambda i: (0, 0)),
            pl.BlockSpec((1, hidden), lambda i: (0, 0)),
            pl.BlockSpec((hidden, _NPAD), lambda i: (0, 0)),
            pl.BlockSpec((1, _NPAD), lambda i: (0, 0)),
        ],
        out_specs=pl.BlockSpec((tile_rows, _NPAD), lambda i: (i, 0)),
        out_shape=jax.ShapeDtypeStruct((B, _NPAD), jnp.float32),
        compiler_params=pltpu.CompilerParams(
            dimension_semantics=("parallel",),
            vmem_limit_bytes=32 * 1024 * 1024),
        cost_estimate=pl.CostEstimate(flops=flops, transcendentals=B * (_NPAD + 1),
                                      bytes_accessed=bytes_acc),
    )(feat, mu_w_perm, bmu, wcls, bcls)
    return out[:, :_NCLS]


# --------------------------------- forward ---------------------------------- #

def self_taught_forward(x, params, *, tile_h=None, head_rows=None,
                        operand_dtype=jnp.float32):
    """x: [B, Cin, H, W] float (NCHW, PyTorch convention). Returns log-probs [B, 10]."""
    B, Cin, H, W = x.shape
    Cout = params["conv_w"].shape[0]
    hidden = params["mu_w"].shape[0]

    conv_out = _conv_relu(x, params["conv_w"], params["conv_b"],
                          tile_h=tile_h, operand_dtype=operand_dtype)
    # Free (contiguous) flatten: [B*H*W, Cout] -> [B, H*W*Cout], NHWC feature order.
    feat = conv_out.reshape(B, H * W * Cout)

    # Fold the NCHW feature permutation (torch .view(B,-1) on NCHW) into the mu
    # weight once, instead of transposing the activations between kernels.
    mu_w_perm = (params["mu_w"].T                       # [F, hidden], rows (c, h, w)
                 .reshape(Cout, H, W, hidden)
                 .transpose(1, 2, 0, 3)                 # rows (h, w, c)
                 .reshape(H * W * Cout, hidden)
                 .astype(operand_dtype))

    return _head(feat, mu_w_perm, params["mu_b"], params["cls_w"], params["cls_b"],
                 tile_rows=head_rows)


# -------------------------------- reference --------------------------------- #

def _reference(x, params):
    out = jax.lax.conv_general_dilated(
        x, params["conv_w"], window_strides=(1, 1), padding=((1, 1), (1, 1)),
        dimension_numbers=("NCHW", "OIHW", "NCHW"))
    out = jnp.maximum(out + params["conv_b"][None, :, None, None], 0.0)
    feat = out.reshape(x.shape[0], -1)
    h = feat @ params["mu_w"].T + params["mu_b"]
    logits = h @ params["cls_w"].T + params["cls_b"]
    return jax.nn.log_softmax(logits, axis=-1)


# ----------------------------------- main ------------------------------------ #

if __name__ == "__main__":
    B, Cin, H, W = 2, 4, 16, 16
    Cout = 8
    hidden = 32                       # "size" arg of SelfTaught (classifier input dim)
    feat_dim = Cout * H * W           # 2048

    key = jax.random.PRNGKey(0)
    k = jax.random.split(key, 7)
    params = {
        "conv_w": 0.1 * jax.random.normal(k[0], (Cout, Cin, 3, 3), jnp.float32),
        "conv_b": 0.1 * jax.random.normal(k[1], (Cout,), jnp.float32),
        "mu_w":   0.02 * jax.random.normal(k[2], (hidden, feat_dim), jnp.float32),
        "mu_b":   0.1 * jax.random.normal(k[3], (hidden,), jnp.float32),
        "cls_w":  0.1 * jax.random.normal(k[4], (_NCLS, hidden), jnp.float32),
        "cls_b":  0.1 * jax.random.normal(k[5], (_NCLS,), jnp.float32),
    }
    x = jax.random.normal(k[6], (B, Cin, H, W), jnp.float32)

    # tile_h=8 -> conv grid (2, 2): exercises both grid axes + the pl.ds row tiling.
    fwd = jax.jit(functools.partial(self_taught_forward, tile_h=8))
    out = jax.block_until_ready(fwd(x, params))
    ref = jax.block_until_ready(_reference(x, params))

    assert out.shape == (B, _NCLS) and out.dtype == jnp.float32
    assert jnp.allclose(out, ref, atol=2e-4, rtol=2e-4), "mismatch vs reference"
    print("KERNEL_OK")
</pallas_src>

<mosaic_0001>
module attributes {stable_mosaic.version = 11 : i64} {
  func.func @kernel(%arg0: i32, %arg1: i32, %arg2: memref<1x18x18x4xf32, #tpu.memory_space<vmem>>, %arg3: memref<9x4x8xf32, #tpu.memory_space<vmem>>, %arg4: memref<1x8xf32, #tpu.memory_space<vmem>>, %arg5: memref<128x8xf32, #tpu.memory_space<vmem>>) attributes {dimension_semantics = [#tpu.dimension_semantics<parallel>, #tpu.dimension_semantics<parallel>], iteration_bounds = array<i64: 2, 2>, scalar_prefetch = 0 : i64, scratch_operands = 0 : i64, tpu.core_type = #tpu.core_type<tc>, window_params = [{transform_indices = @transform_0, window_bounds = array<i64: 1, 18, 18, 4>}, {pipeline_mode = #tpu.pipeline_mode<synchronous>, transform_indices = @transform_1, window_bounds = array<i64: 9, 4, 8>}, {pipeline_mode = #tpu.pipeline_mode<synchronous>, transform_indices = @transform_2, window_bounds = array<i64: 1, 8>}, {transform_indices = @transform_3, window_bounds = array<i64: 128, 8>}]} {
    %c8_i32 = arith.constant 8 : i32
    %0 = arith.muli %arg1, %c8_i32 : i32
    %1 = tpu.assume_multiple %0, 8 : i32
    %c0 = arith.constant 0 : index
    %2 = arith.index_cast %1 : i32 to index
    %c0_0 = arith.constant 0 : index
    %c0_1 = arith.constant 0 : index
    %3 = vector.load %arg2[%c0, %2, %c0_0, %c0_1] : memref<1x18x18x4xf32, #tpu.memory_space<vmem>>, vector<1x10x18x4xf32>
    %4 = vector.extract_strided_slice %3 {offsets = [0, 0, 0, 0], sizes = [1, 8, 16, 4], strides = [1, 1, 1, 1]} : vector<1x10x18x4xf32> to vector<1x8x16x4xf32>
    %5 = vector.shape_cast %4 : vector<1x8x16x4xf32> to vector<128x4xf32>
    %c0_2 = arith.constant 0 : index
    %c0_3 = arith.constant 0 : index
    %c0_4 = arith.constant 0 : index
    %6 = vector.load %arg3[%c0_2, %c0_3, %c0_4] : memref<9x4x8xf32, #tpu.memory_space<vmem>>, vector<1x4x8xf32>
    %7 = vector.shape_cast %6 : vector<1x4x8xf32> to vector<4x8xf32>
    %cst = arith.constant dense<0.000000e+00> : vector<128x8xf32>
    %8 = tpu.matmul %5, %7, %cst {dimension_numbers = #tpu.dot_dimension_numbers<[1], [0], [0], [1], [0, 0, 1, 1], [], []>} : vector<128x4xf32>, vector<4x8xf32>, vector<128x8xf32> -> vector<128x8xf32>
    %9 = vector.extract_strided_slice %3 {offsets = [0, 0, 1, 0], sizes = [1, 8, 16, 4], strides = [1, 1, 1, 1]} : vector<1x10x18x4xf32> to vector<1x8x16x4xf32>
    %10 = vector.shape_cast %9 : vector<1x8x16x4xf32> to vector<128x4xf32>
    %c1 = arith.constant 1 : index
    %c0_5 = arith.constant 0 : index
    %c0_6 = arith.constant 0 : index
    %11 = vector.load %arg3[%c1, %c0_5, %c0_6] : memref<9x4x8xf32, #tpu.memory_space<vmem>>, vector<1x4x8xf32>
    %12 = vector.shape_cast %11 : vector<1x4x8xf32> to vector<4x8xf32>
    %cst_7 = arith.constant dense<0.000000e+00> : vector<128x8xf32>
    %13 = tpu.matmul %10, %12, %cst_7 {dimension_numbers = #tpu.dot_dimension_numbers<[1], [0], [0], [1], [0, 0, 1, 1], [], []>} : vector<128x4xf32>, vector<4x8xf32>, vector<128x8xf32> -> vector<128x8xf32>
    %14 = arith.addf %8, %13 : vector<128x8xf32>
    %15 = vector.extract_strided_slice %3 {offsets = [0, 0, 2, 0], sizes = [1, 8, 16, 4], strides = [1, 1, 1, 1]} : vector<1x10x18x4xf32> to vector<1x8x16x4xf32>
    %16 = vector.shape_cast %15 : vector<1x8x16x4xf32> to vector<128x4xf32>
    %c2 = arith.constant 2 : index
    %c0_8 = arith.constant 0 : index
    %c0_9 = arith.constant 0 : index
    %17 = vector.load %arg3[%c2, %c0_8, %c0_9] : memref<9x4x8xf32, #tpu.memory_space<vmem>>, vector<1x4x8xf32>
    %18 = vector.shape_cast %17 : vector<1x4x8xf32> to vector<4x8xf32>
    %cst_10 = arith.constant dense<0.000000e+00> : vector<128x8xf32>
    %19 = tpu.matmul %16, %18, %cst_10 {dimension_numbers = #tpu.dot_dimension_numbers<[1], [0], [0], [1], [0, 0, 1, 1], [], []>} : vector<128x4xf32>, vector<4x8xf32>, vector<128x8xf32> -> vector<128x8xf32>
    %20 = arith.addf %14, %19 : vector<128x8xf32>
    %21 = vector.extract_strided_slice %3 {offsets = [0, 1, 0, 0], sizes = [1, 8, 16, 4], strides = [1, 1, 1, 1]} : vector<1x10x18x4xf32> to vector<1x8x16x4xf32>
    %22 = vector.shape_cast %21 : vector<1x8x16x4xf32> to vector<128x4xf32>
    %c3 = arith.constant 3 : index
    %c0_11 = arith.constant 0 : index
    %c0_12 = arith.constant 0 : index
    %23 = vector.load %arg3[%c3, %c0_11, %c0_12] : memref<9x4x8xf32, #tpu.memory_space<vmem>>, vector<1x4x8xf32>
    %24 = vector.shape_cast %23 : vector<1x4x8xf32> to vector<4x8xf32>
    %cst_13 = arith.constant dense<0.000000e+00> : vector<128x8xf32>
    %25 = tpu.matmul %22, %24, %cst_13 {dimension_numbers = #tpu.dot_dimension_numbers<[1], [0], [0], [1], [0, 0, 1, 1], [], []>} : vector<128x4xf32>, vector<4x8xf32>, vector<128x8xf32> -> vector<128x8xf32>
    %26 = arith.addf %20, %25 : vector<128x8xf32>
    %27 = vector.extract_strided_slice %3 {offsets = [0, 1, 1, 0], sizes = [1, 8, 16, 4], strides = [1, 1, 1, 1]} : vector<1x10x18x4xf32> to vector<1x8x16x4xf32>
    %28 = vector.shape_cast %27 : vector<1x8x16x4xf32> to vector<128x4xf32>
    %c4 = arith.constant 4 : index
    %c0_14 = arith.constant 0 : index
    %c0_15 = arith.constant 0 : index
    %29 = vector.load %arg3[%c4, %c0_14, %c0_15] : memref<9x4x8xf32, #tpu.memory_space<vmem>>, vector<1x4x8xf32>
    %30 = vector.shape_cast %29 : vector<1x4x8xf32> to vector<4x8xf32>
    %cst_16 = arith.constant dense<0.000000e+00> : vector<128x8xf32>
    %31 = tpu.matmul %28, %30, %cst_16 {dimension_numbers = #tpu.dot_dimension_numbers<[1], [0], [0], [1], [0, 0, 1, 1], [], []>} : vector<128x4xf32>, vector<4x8xf32>, vector<128x8xf32> -> vector<128x8xf32>
    %32 = arith.addf %26, %31 : vector<128x8xf32>
    %33 = vector.extract_strided_slice %3 {offsets = [0, 1, 2, 0], sizes = [1, 8, 16, 4], strides = [1, 1, 1, 1]} : vector<1x10x18x4xf32> to vector<1x8x16x4xf32>
    %34 = vector.shape_cast %33 : vector<1x8x16x4xf32> to vector<128x4xf32>
    %c5 = arith.constant 5 : index
    %c0_17 = arith.constant 0 : index
    %c0_18 = arith.constant 0 : index
    %35 = vector.load %arg3[%c5, %c0_17, %c0_18] : memref<9x4x8xf32, #tpu.memory_space<vmem>>, vector<1x4x8xf32>
    %36 = vector.shape_cast %35 : vector<1x4x8xf32> to vector<4x8xf32>
    %cst_19 = arith.constant dense<0.000000e+00> : vector<128x8xf32>
    %37 = tpu.matmul %34, %36, %cst_19 {dimension_numbers = #tpu.dot_dimension_numbers<[1], [0], [0], [1], [0, 0, 1, 1], [], []>} : vector<128x4xf32>, vector<4x8xf32>, vector<128x8xf32> -> vector<128x8xf32>
    %38 = arith.addf %32, %37 : vector<128x8xf32>
    %39 = vector.extract_strided_slice %3 {offsets = [0, 2, 0, 0], sizes = [1, 8, 16, 4], strides = [1, 1, 1, 1]} : vector<1x10x18x4xf32> to vector<1x8x16x4xf32>
    %40 = vector.shape_cast %39 : vector<1x8x16x4xf32> to vector<128x4xf32>
    %c6 = arith.constant 6 : index
    %c0_20 = arith.constant 0 : index
    %c0_21 = arith.constant 0 : index
    %41 = vector.load %arg3[%c6, %c0_20, %c0_21] : memref<9x4x8xf32, #tpu.memory_space<vmem>>, vector<1x4x8xf32>
    %42 = vector.shape_cast %41 : vector<1x4x8xf32> to vector<4x8xf32>
    %cst_22 = arith.constant dense<0.000000e+00> : vector<128x8xf32>
    %43 = tpu.matmul %40, %42, %cst_22 {dimension_numbers = #tpu.dot_dimension_numbers<[1], [0], [0], [1], [0, 0, 1, 1], [], []>} : vector<128x4xf32>, vector<4x8xf32>, vector<128x8xf32> -> vector<128x8xf32>
    %44 = arith.addf %38, %43 : vector<128x8xf32>
    %45 = vector.extract_strided_slice %3 {offsets = [0, 2, 1, 0], sizes = [1, 8, 16, 4], strides = [1, 1, 1, 1]} : vector<1x10x18x4xf32> to vector<1x8x16x4xf32>
    %46 = vector.shape_cast %45 : vector<1x8x16x4xf32> to vector<128x4xf32>
    %c7 = arith.constant 7 : index
    %c0_23 = arith.constant 0 : index
    %c0_24 = arith.constant 0 : index
    %47 = vector.load %arg3[%c7, %c0_23, %c0_24] : memref<9x4x8xf32, #tpu.memory_space<vmem>>, vector<1x4x8xf32>
    %48 = vector.shape_cast %47 : vector<1x4x8xf32> to vector<4x8xf32>
    %cst_25 = arith.constant dense<0.000000e+00> : vector<128x8xf32>
    %49 = tpu.matmul %46, %48, %cst_25 {dimension_numbers = #tpu.dot_dimension_numbers<[1], [0], [0], [1], [0, 0, 1, 1], [], []>} : vector<128x4xf32>, vector<4x8xf32>, vector<128x8xf32> -> vector<128x8xf32>
    %50 = arith.addf %44, %49 : vector<128x8xf32>
    %51 = vector.extract_strided_slice %3 {offsets = [0, 2, 2, 0], sizes = [1, 8, 16, 4], strides = [1, 1, 1, 1]} : vector<1x10x18x4xf32> to vector<1x8x16x4xf32>
    %52 = vector.shape_cast %51 : vector<1x8x16x4xf32> to vector<128x4xf32>
    %c8 = arith.constant 8 : index
    %c0_26 = arith.constant 0 : index
    %c0_27 = arith.constant 0 : index
    %53 = vector.load %arg3[%c8, %c0_26, %c0_27] : memref<9x4x8xf32, #tpu.memory_space<vmem>>, vector<1x4x8xf32>
    %54 = vector.shape_cast %53 : vector<1x4x8xf32> to vector<4x8xf32>
    %cst_28 = arith.constant dense<0.000000e+00> : vector<128x8xf32>
    %55 = tpu.matmul %52, %54, %cst_28 {dimension_numbers = #tpu.dot_dimension_numbers<[1], [0], [0], [1], [0, 0, 1, 1], [], []>} : vector<128x4xf32>, vector<4x8xf32>, vector<128x8xf32> -> vector<128x8xf32>
    %56 = arith.addf %50, %55 : vector<128x8xf32>
    %c0_29 = arith.constant 0 : index
    %c0_30 = arith.constant 0 : index
    %57 = vector.load %arg4[%c0_29, %c0_30] : memref<1x8xf32, #tpu.memory_space<vmem>>, vector<1x8xf32>
    %58 = vector.broadcast %57 : vector<1x8xf32> to vector<128x8xf32>
    %59 = arith.addf %56, %58 : vector<128x8xf32>
    %cst_31 = arith.constant 0.000000e+00 : f32
    %60 = vector.broadcast %cst_31 : f32 to vector<128x8xf32>
    %61 = arith.maximumf %59, %60 : vector<128x8xf32>
    %c0_32 = arith.constant 0 : index
    %c0_33 = arith.constant 0 : index
    %62 = vector.load %arg5[%c0_32, %c0_33] : memref<128x8xf32, #tpu.memory_space<vmem>>, vector<128x8xf32>
    tpu.vector_store %arg5[%c0_32, %c0_33], %61 {strides = array<i32>} : memref<128x8xf32, #tpu.memory_space<vmem>>, vector<128x8xf32>,
    return
  }
  func.func @transform_0(%arg0: i32, %arg1: i32) -> (i32, i32, i32, i32) {
    %c0_i32 = arith.constant 0 : i32
    %c0_i32_0 = arith.constant 0 : i32
    %c0_i32_1 = arith.constant 0 : i32
    %c0_i32_2 = arith.constant 0 : i32
    return %arg0, %c0_i32, %c0_i32_0, %c0_i32_1 : i32, i32, i32, i32
  }
  func.func @transform_1(%arg0: i32, %arg1: i32) -> (i32, i32, i32) {
    %c0_i32 = arith.constant 0 : i32
    %c0_i32_0 = arith.constant 0 : i32
    %c0_i32_1 = arith.constant 0 : i32
    %c0_i32_2 = arith.constant 0 : i32
    return %c0_i32, %c0_i32_0, %c0_i32_1 : i32, i32, i32
  }
  func.func @transform_2(%arg0: i32, %arg1: i32) -> (i32, i32) {
    %c0_i32 = arith.constant 0 : i32
    %c0_i32_0 = arith.constant 0 : i32
    %c0_i32_1 = arith.constant 0 : i32
    return %c0_i32, %c0_i32_0 : i32, i32
  }
  func.func @transform_3(%arg0: i32, %arg1: i32) -> (i32, i32) {
    %c2_i32 = arith.constant 2 : i32
    %0 = arith.muli %arg0, %c2_i32 : i32
    %1 = arith.addi %0, %arg1 : i32
    %c0_i32 = arith.constant 0 : i32
    %c0_i32_0 = arith.constant 0 : i32
    return %1, %c0_i32 : i32, i32
  }
}

module attributes {stable_mosaic.version = 11 : i64} {
  func.func @_head_kernel(%arg0: i32, %arg1: memref<2x2048xf32, #tpu.memory_space<vmem>>, %arg2: memref<2048x32xf32, #tpu.memory_space<vmem>>, %arg3: memref<1x32xf32, #tpu.memory_space<vmem>>, %arg4: memref<32x128xf32, #tpu.memory_space<vmem>>, %arg5: memref<1x128xf32, #tpu.memory_space<vmem>>, %arg6: memref<2x128xf32, #tpu.memory_space<vmem>>) attributes {dimension_semantics = [#tpu.dimension_semantics<parallel>], iteration_bounds = array<i64: 1>, scalar_prefetch = 0 : i64, scratch_operands = 0 : i64, tpu.core_type = #tpu.core_type<tc>, window_params = [{transform_indices = @transform_0, window_bounds = array<i64: 2, 2048>}, {pipeline_mode = #tpu.pipeline_mode<synchronous>, transform_indices = @transform_1, window_bounds = array<i64: 2048, 32>}, {pipeline_mode = #tpu.pipeline_mode<synchronous>, transform_indices = @transform_2, window_bounds = array<i64: 1, 32>}, {pipeline_mode = #tpu.pipeline_mode<synchronous>, transform_indices = @transform_3, window_bounds = array<i64: 32, 128>}, {pipeline_mode = #tpu.pipeline_mode<synchronous>, transform_indices = @transform_4, window_bounds = array<i64: 1, 128>}, {transform_indices = @transform_5, window_bounds = array<i64: 2, 128>}]} {
    %c0 = arith.constant 0 : index
    %c0_0 = arith.constant 0 : index
    %0 = vector.load %arg1[%c0, %c0_0] : memref<2x2048xf32, #tpu.memory_space<vmem>>, vector<2x2048xf32>
    %c0_1 = arith.constant 0 : index
    %c0_2 = arith.constant 0 : index
    %1 = vector.load %arg2[%c0_1, %c0_2] : memref<2048x32xf32, #tpu.memory_space<vmem>>, vector<2048x32xf32>
    %cst = arith.constant dense<0.000000e+00> : vector<2x32xf32>
    %2 = tpu.matmul %0, %1, %cst {dimension_numbers = #tpu.dot_dimension_numbers<[1], [0], [0], [1], [0, 0, 1, 1], [], []>} : vector<2x2048xf32>, vector<2048x32xf32>, vector<2x32xf32> -> vector<2x32xf32>
    %c0_3 = arith.constant 0 : index
    %c0_4 = arith.constant 0 : index
    %3 = vector.load %arg3[%c0_3, %c0_4] : memref<1x32xf32, #tpu.memory_space<vmem>>, vector<1x32xf32>
    %4 = vector.broadcast %3 : vector<1x32xf32> to vector<2x32xf32>
    %5 = arith.addf %2, %4 : vector<2x32xf32>
    %c0_5 = arith.constant 0 : index
    %c0_6 = arith.constant 0 : index
    %6 = vector.load %arg4[%c0_5, %c0_6] : memref<32x128xf32, #tpu.memory_space<vmem>>, vector<32x128xf32>
    %cst_7 = arith.constant dense<0.000000e+00> : vector<2x128xf32>
    %7 = tpu.matmul %5, %6, %cst_7 {dimension_numbers = #tpu.dot_dimension_numbers<[1], [0], [0], [1], [0, 0, 1, 1], [], []>} : vector<2x32xf32>, vector<32x128xf32>, vector<2x128xf32> -> vector<2x128xf32>
    %c0_8 = arith.constant 0 : index
    %c0_9 = arith.constant 0 : index
    %8 = vector.load %arg5[%c0_8, %c0_9] : memref<1x128xf32, #tpu.memory_space<vmem>>, vector<1x128xf32>
    %9 = vector.broadcast %8 : vector<1x128xf32> to vector<2x128xf32>
    %10 = arith.addf %7, %9 : vector<2x128xf32>
    %cst_10 = arith.constant dense<0xFF800000> : vector<2xf32>
    %11 = vector.multi_reduction <maximumf>, %10, %cst_10 [1] : vector<2x128xf32> to vector<2xf32>
    %12 = vector.shape_cast %11 : vector<2xf32> to vector<2x1xf32>
    %13 = vector.broadcast %12 : vector<2x1xf32> to vector<2x128xf32>
    %14 = arith.subf %10, %13 : vector<2x128xf32>
    %15 = math.exp %14 : vector<2x128xf32>
    %cst_11 = arith.constant dense<0.000000e+00> : vector<2xf32>
    %16 = vector.multi_reduction <add>, %15, %cst_11 [1] : vector<2x128xf32> to vector<2xf32>
    %17 = vector.shape_cast %16 : vector<2xf32> to vector<2x1xf32>
    %18 = math.log %17 : vector<2x1xf32>
    %19 = vector.broadcast %18 : vector<2x1xf32> to vector<2x128xf32>
    %20 = arith.subf %14, %19 : vector<2x128xf32>
    %c0_12 = arith.constant 0 : index
    %c0_13 = arith.constant 0 : index
    %21 = vector.load %arg6[%c0_12, %c0_13] : memref<2x128xf32, #tpu.memory_space<vmem>>, vector<2x128xf32>
    tpu.vector_store %arg6[%c0_12, %c0_13], %20 {strides = array<i32>} : memref<2x128xf32, #tpu.memory_space<vmem>>, vector<2x128xf32>,
    return
  }
  func.func @transform_0(%arg0: i32) -> (i32, i32) {
    %c0_i32 = arith.constant 0 : i32
    %c0_i32_0 = arith.constant 0 : i32
    return %arg0, %c0_i32 : i32, i32
  }
  func.func @transform_1(%arg0: i32) -> (i32, i32) {
    %c0_i32 = arith.constant 0 : i32
    %c0_i32_0 = arith.constant 0 : i32
    %c0_i32_1 = arith.constant 0 : i32
    return %c0_i32, %c0_i32_0 : i32, i32
  }
  func.func @transform_2(%arg0: i32) -> (i32, i32) {
    %c0_i32 = arith.constant 0 : i32
    %c0_i32_0 = arith.constant 0 : i32
    %c0_i32_1 = arith.constant 0 : i32
    return %c0_i32, %c0_i32_0 : i32, i32
  }
  func.func @transform_3(%arg0: i32) -> (i32, i32) {
    %c0_i32 = arith.constant 0 : i32
    %c0_i32_0 = arith.constant 0 : i32
    %c0_i32_1 = arith.constant 0 : i32
    return %c0_i32, %c0_i32_0 : i32, i32
  }
  func.func @transform_4(%arg0: i32) -> (i32, i32) {
    %c0_i32 = arith.constant 0 : i32
    %c0_i32_0 = arith.constant 0 : i32
    %c0_i32_1 = arith.constant 0 : i32
    return %c0_i32, %c0_i32_0 : i32, i32
  }
  func.func @transform_5(%arg0: i32) -> (i32, i32) {
    %c0_i32 = arith.constant 0 : i32
    %c0_i32_0 = arith.constant 0 : i32
    return %arg0, %c0_i32 : i32, i32
  }
}

</mosaic_0001>

<bundles_post_ra>
// kernel: self_taught_forward.2
= control target key start
LH: loop header
LB: loop body
LE: loop exit
PB: predicated region body
PF: predicated region fallthrough
CT: control target
= control target key end

     0   :  { %s1632_s12 = smov 0   ;;  %s1634_s13 = smov 0   ;;  %s2360_s0 = inlined_call_operand.vmem [shape: f32[2,18,18,4], index: 0, kind: input, shape index: {}]   ;;  %s2361_s1 = inlined_call_operand.vmem [shape: f32[9,4,8], index: 1, kind: input, shape index: {}]   ;;  %s2362_s2 = inlined_call_operand.vmem [shape: f32[1,8], index: 2, kind: input, shape index: {}]   ;;  %s2363_s3 = inlined_call_operand.vmem [shape: f32[512,8], index: 3, kind: output, shape index: {}]  }
   0x1   :  { %s1636_s14 = smov 0   ;;  %s1638_s15 = smov 0  }
   0x2   :  { %s1640_s16 = smov 0  }
   0x3 LB: > { %s22_s17 = sadd.s32 1, %s1602_s14  ;;  %s25_s18 = sadd.s32 1, %s1606_s15  ;;  %s1610_s16 = sphi %s1640_s16, %s13_s16   ;;  %s1606_s15 = sphi %s1638_s15, %s2376_s15   ;;  %s1602_s14 = sphi %s1636_s14, %s2375_s14   ;;  %s1598_s13 = sphi %s1634_s13, %s2374_s13   ;;  %s1594_s12 = sphi %s1632_s12, %s2373_s12  }
   0x4   : > { %p23_p0 = scmp.ge.s32.totalorder %s22_s17, 2  ;;  %p1357_p1 = scmp.ge.s32.totalorder %s1610_s16, 1 }
   0x5   : > { %p153_p2 = scmp.lt.s32.totalorder %s1610_s16, 5 }
   0x6   : > { %s2378_s17 = smov (%p23_p0, %s22_s17), 0  ;;  %s2380_s18 = smov (!%p23_p0, %s25_s18), %s1606_s15 }
   0x7   : > { %p154_p3 = pnand %p1357_p1, %p153_p2  ;;  %p27_p4 = scmp.ge.s32.totalorder %s2380_s18, 2 }
   0x9   : > { %s2382_s18 = smov (%p27_p4, %s2380_s18), 0  ;;  %157 = sbr.rel (%p154_p3) target bundleno = 450 (0x1c2), region = 32 }
   0xe   : > { %v1364_v0 = vld [vmem:[%s2361_s1 + $0x4] sm:$0xf]  ;;  %vm328_vm0 = vcmask 1043456   ;;  %p179_p5 = scmp.lt.s32.totalorder %s1598_s13, 1  ;;  %v1399_v1 = vld [vmem:[%s2361_s1 + $0x8] sm:$0xf] }
   0xf   : > { %1527 = vmatpush.msk.msra.mxu1 %vm328_vm0, %v1364_v0  ;;  %1528 = vmatpush.msk.msra.mxu2 %vm328_vm0, %v1364_v0  ;;  %v1417_v2 = vld [vmem:[%s2361_s1 + $0xc] sm:$0xf]  ;;  %v227_v3 = vld [vmem:[%s2361_s1] sm:$0xf]  ;;  %v1435_v4 = vld [vmem:[%s2361_s1 + $0x10] sm:$0xf] }
  0x10   : > { %s180_s25 = scalar_select %p179_p5, %s1598_s13, 1  ;;  %1529 = vmatpush.msk.msra.mxu3 %vm328_vm0, %v1364_v0  ;;  %1365 = vmatpush.msk.msra.mxu0 %vm328_vm0, %v1364_v0  ;;  %vm252_vm1 = vcmask 1046528   ;;  %vm295_vm2 = vcmask 31744   ;;  %v1471_v36 = vld [vmem:[%s2361_s1 + $0x18] sm:$0xf]  ;;  %vm497_vm3 = vcmask 1045504  }
  0x11   : > { %1400 = vmatpush.msk.msrb.mxu2 %vm328_vm0, %v1399_v1  ;;  %s1363_s30 = smul.u32 192, %s1594_s12  ;;  %1382 = vmatpush.msk.msrb.mxu1 %vm328_vm0, %v227_v3  ;;  %v1489_v41 = vld [vmem:[%s2361_s1 + $0x1c] sm:$0xf]  ;;  %v1453_v44 = vld [vmem:[%s2361_s1 + $0x14] sm:$0xf]  ;;  %s1359_s24 = sshll.u32 %s1598_s13, 1 }
  0x12   : > { %1418 = vmatpush.msk.msrb.mxu3 %vm328_vm0, %v1417_v2  ;;  %s1530_s4 = smul.u32 432, %s180_s25  ;;  %1436 = vmatpush.msk.msrb.mxu0 %vm328_vm0, %v1435_v4  ;;  %v1507_v50 = vld [vmem:[%s2361_s1 + $0x20] sm:$0xf]  ;;  %s185_s25 = sadd.s32 %s1594_s12, %s1359_s24  ;;  %vm1258_vm4 = vcmask 64512  }
  0x13   : > { %s1360_s26 = sshll.u32 %s185_s25, 4 }
  0x14   : > { %s183_s7 = scalar_lea.vmem %s2360_s0, %s1530_s4  ;;  %p187_p6 = scmp.lt.s32.totalorder %s1360_s26, 63 }
  0x15   : > { %s1695_s8 = scalar_lea.vmem %s183_s7, %s1363_s30 }
  0x16   : > { %v1698_v5 = vld [vmem:[%s1695_s8 + $0x30] sm:$0xff]  ;;  %v1701_v6 = vld [vmem:[%s1695_s8 + $0x38] sm:$0xff]  ;;  %v1704_v7 = vld [vmem:[%s1695_s8 + $0x60] sm:$0xff]  ;;  %s2384_s26 = smov (!%p187_p6, %s1360_s26), 63 }
  0x17   : > { %v263_v8 = vrot.slane %v1698_v5, 1  ;;  %v264_v9 = vrot.slane %v1701_v6, 1  ;;  %v1709_v10 = vld [vmem:[%s1695_s8 + $0x68] sm:$0xff]  ;;  %v273_v11 = vrot.slane %v1704_v7, 1  ;;  %v1713_v12 = vld [vmem:[%s1695_s8 + $0x90] sm:$0xff]  ;;  %v1716_v13 = vld [vmem:[%s1695_s8 + $0x98] sm:$0xff] }
  0x18   : > { %v274_v14 = vrot.slane %v1709_v10, 1  ;;  %v283_v15 = vrot.slane %v1713_v12, 1  ;;  %v284_v16 = vrot.slane %v1716_v13, 1  ;;  %v1722_v17 = vld [vmem:[%s1695_s8 + $0x40] sm:$0x3]  ;;  %v1734_v21 = vld [vmem:[%s1695_s8 + $0x8] sm:$0xff] }
  0x19   : > { %v1725_v18 = vld [vmem:[%s1695_s8] sm:$0xff]  ;;  %v1728_v19 = vsel %vm252_vm1, %v263_v8, %v264_v9  ;;  %v1731_v20 = vld [vmem:[%s1695_s8 + $0x70] sm:$0x3]  ;;  %v254_v25 = vrot.slane %v1734_v21, 1  ;;  %v266_v27 = vrot.slane %v1722_v17, 1  ;;  %v1766_v34 = vld [vmem:[%s1695_s8 + $0x48] sm:$0xff] }
  0x1a   : > { %v253_v22 = vrot.slane %v1725_v18, 1  ;;  %1370 = vmatmul.msk.f32.vlgmr.msra.gmra.mxu1 %vm295_vm2, %v1728_v19  ;;  %v1740_v23 = vsel %vm252_vm1, %v273_v11, %v274_v14  ;;  %v1743_v24 = vsel %vm252_vm1, %v283_v15, %v284_v16  ;;  %v1747_v26 = vld [vmem:[%s1695_s8 + $0xa0] sm:$0x3]  ;;  %v1755_v28 = vld [vmem:[%s1695_s8 + $0x10] sm:$0x3]  ;;  %v276_v29 = vrot.slane %v1731_v20, 1 }
  0x1b   : > { %1374 = vmatmul.msk.f32.vlgmr.msra.gmra.mxu2 %vm295_vm2, %v1740_v23  ;;  %1378 = vmatmul.msk.f32.vlgmr.msra.gmra.mxu3 %vm295_vm2, %v1743_v24  ;;  %v286_v31 = vrot.slane %v1747_v26, 1  ;;  %v256_v32 = vrot.slane %v1755_v28, 1  ;;  %v1763_v33 = vsel %vm252_vm1, %v264_v9, %v266_v27  ;;  %v1769_v35 = vld [vmem:[%s1695_s8 + $0x50] sm:$0xff]  ;;  %v1781_v39 = vld [vmem:[%s1695_s8 + $0x78] sm:$0xff]  ;;  %v1784_v40 = vld [vmem:[%s1695_s8 + $0x80] sm:$0xff]  ;;  %v268_v46 = vrot.slane %v1766_v34, 1 }
  0x1c   : > { %v255_v30 = vsel %vm252_vm1, %v253_v22, %v254_v25  ;;  %v1775_v37 = vsel %vm252_vm1, %v274_v14, %v276_v29  ;;  %1472 = vmatpush.msk.msra.mxu2 %vm328_vm0, %v1471_v36  ;;  %v1791_v42 = vld [vmem:[%s1695_s8 + $0xa8] sm:$0xff]  ;;  %v1794_v43 = vld [vmem:[%s1695_s8 + $0xb0] sm:$0xff]  ;;  %1490 = vmatpush.msk.msra.mxu3 %vm328_vm0, %v1489_v41  ;;  %v269_v47 = vrot.slane %v1769_v35, 1  ;;  %v200_v48 = vld [vmem:[%s1695_s8 + $0x18] sm:$0xff]  ;;  %v278_v51 = vrot.slane %v1781_v39, 1  ;;  %s1361_s27 = sshll.u32 %s2384_s26, 3 }
  0x1d   : > { %1366 = vmatmul.msk.f32.vlgmr.msra.gmra.mxu0 %vm295_vm2, %v255_v30  ;;  %v1778_v38 = vsel %vm252_vm1, %v284_v16, %v286_v31  ;;  %v257_v45 = vsel %vm252_vm1, %v254_v25, %v256_v32  ;;  %v201_v49 = vld [vmem:[%s1695_s8 + $0x20] sm:$0xff]  ;;  %v279_v52 = vrot.slane %v1784_v40, 1  ;;  %v288_v53 = vrot.slane %v1791_v42, 1  ;;  %1454 = vmatpush.msk.msra.mxu1 %vm328_vm0, %v1453_v44  ;;  %v1831_v60 = vld [vmem:[%s1695_s8 + $0x58] sm:$0x3]  ;;  %s2282_s30 = scalar_lea.vmem %s2363_s3, %s1361_s27 }
  0x1e   : > { %v289_v54 = vrot.slane %v1794_v43, 1  ;;  %1508 = vmatpush.msk.msra.mxu0 %vm328_vm0, %v1507_v50  ;;  %v258_v55 = vrot.slane %v200_v48, 1  ;;  %v259_v56 = vrot.slane %v201_v49, 1  ;;  %v1822_v57 = vsel %vm252_vm1, %v268_v46, %v269_v47  ;;  %v1834_v61 = vld [vmem:[%s1695_s8 + $0x88] sm:$0x3] }
  0x1f   : > { %v1825_v58 = vsel %vm252_vm1, %v278_v51, %v279_v52  ;;  %v1837_v62 = vld [vmem:[%s1695_s8 + $0xb8] sm:$0x3]  ;;  %v271_v0 = vrot.slane %v1831_v60, 1  ;;  %v202_v1 = vld [vmem:[%s1695_s8 + $0x28] sm:$0x3]  ;;  %v281_v2 = vrot.slane %v1834_v61, 1 }
  0x20   : > { %v1828_v59 = vsel %vm252_vm1, %v288_v53, %v289_v54  ;;  %v260_v63 = vsel %vm252_vm1, %v258_v55, %v259_v56  ;;  %v291_v3 = vrot.slane %v1837_v62, 1  ;;  %v261_v4 = vrot.slane %v202_v1, 1 }
  0x21   : > { %v1852_v8 = vsel %vm252_vm1, %v269_v47, %v271_v0  ;;  %v1855_v9 = vsel %vm252_vm1, %v279_v52, %v281_v2  ;;  %v498_v15 = vrot.slane %v1725_v18, 2  ;;  %v499_v16 = vrot.slane %v1734_v21, 2 }
  0x22   : > { %1371 = vmatmul.msk.f32.gmra.mxu1 %vm295_vm2, %v1763_v33  ;;  %v1858_v11 = vsel %vm252_vm1, %v289_v54, %v291_v3  ;;  %v262_v14 = vsel %vm252_vm1, %v259_v56, %v261_v4  ;;  %v501_v25 = vrot.slane %v1755_v28, 2  ;;  %v503_v29 = vrot.slane %v200_v48, 2 }
  0x23   : > { %1375 = vmatmul.msk.f32.gmra.mxu2 %vm295_vm2, %v1775_v37  ;;  %1379 = vmatmul.msk.f32.gmra.mxu3 %vm295_vm2, %v1778_v38  ;;  %v500_v22 = vsel %vm497_vm3, %v498_v15, %v499_v16  ;;  %v504_v30 = vrot.slane %v201_v49, 2  ;;  %v508_v31 = vrot.slane %v1698_v5, 2  ;;  %v509_v32 = vrot.slane %v1701_v6, 2 }
  0x24   : > { %v502_v27 = vsel %vm497_vm3, %v499_v16, %v501_v25  ;;  %v511_v41 = vrot.slane %v1722_v17, 2  ;;  %v514_v46 = vrot.slane %v1769_v35, 2  ;;  %v516_v47 = vrot.slane %v1831_v60, 2 }
  0x25   : > { %1367 = vmatmul.msk.f32.gmra.mxu0 %vm295_vm2, %v257_v45  ;;  %v1906_v36 = vsel %vm497_vm3, %v508_v31, %v509_v32  ;;  %v513_v45 = vrot.slane %v1766_v34, 2  ;;  %v519_v50 = vrot.slane %v1709_v10, 2  ;;  %v521_v52 = vrot.slane %v1731_v20, 2 }
  0x26   : > { %v1918_v44 = vsel %vm497_vm3, %v509_v32, %v511_v41  ;;  %v523_v54 = vrot.slane %v1781_v39, 2  ;;  %v524_v55 = vrot.slane %v1784_v40, 2  ;;  %v526_v56 = vrot.slane %v1834_v61, 2 }
  0x27   : > { %v1931_v17 = vsel %vm497_vm3, %v513_v45, %v514_v46  ;;  %v1968_v53 = vsel %vm497_vm3, %v519_v50, %v521_v52  ;;  %v529_v0 = vrot.slane %v1716_v13, 2  ;;  %v531_v3 = vrot.slane %v1747_v26, 2  ;;  %v2035_v26 = vld [vmem:[%s1695_s8 + $0xc8] sm:$0xff] }
  0x28   : > { %v1981_v20 = vsel %vm497_vm3, %v523_v54, %v524_v55  ;;  %v1993_v60 = vsel %vm497_vm3, %v524_v55, %v526_v56  ;;  %v533_v25 = vrot.slane %v1791_v42, 2  ;;  %v750_v32 = vrot.slane %v2035_v26, 1 }
  0x29   : > { %v2026_v16 = vsel %vm497_vm3, %v529_v0, %v531_v3 }
  0x2a   : > { %1372 = vmatmul.msk.f32.gmra.mxu1 %vm295_vm2, %v1822_v57 }
  0x2b   : > { %1376 = vmatmul.msk.f32.gmra.mxu2 %vm295_vm2, %v1825_v58  ;;  %1380 = vmatmul.msk.f32.gmra.mxu3 %vm295_vm2, %v1828_v59 }
  0x2d   : > { %1368 = vmatmul.msk.f32.gmra.mxu0 %vm295_vm2, %v260_v63 }
  0x32   : > { %1373 = vmatmul.msk.f32.gmra.mxu1 %vm295_vm2, %v1852_v8 }
  0x33   : > { %1377 = vmatmul.msk.f32.gmra.mxu2 %vm295_vm2, %v1855_v9  ;;  %1381 = vmatmul.msk.f32.gmra.mxu3 %vm295_vm2, %v1858_v11 }
  0x35   : > { %1369 = vmatmul.msk.f32.gmra.mxu0 %vm295_vm2, %v262_v14 }
  0x3a   : > { %1383 = vmatmul.msk.f32.vlgmr.msrb.gmra.mxu1 %vm295_vm2, %v1725_v18  ;;  %v1884_v18 = vsel %vm497_vm3, %v503_v29, %v504_v30  ;;  %v2040_v29 = vld [vmem:[%s1695_s8 + $0xc0] sm:$0xff] }
  0x3b   : > { %1401 = vmatmul.msk.f32.vlgmr.msrb.gmra.mxu2 %vm295_vm2, %v500_v22  ;;  %1419 = vmatmul.msk.f32.vlgmr.msrb.gmra.mxu3 %vm295_vm2, %v200_v48  ;;  %v749_v31 = vrot.slane %v2040_v29, 1 }
  0x3d   : > { %1437 = vmatmul.msk.f32.vlgmr.msrb.gmra.mxu0 %vm295_vm2, %v260_v63  ;;  %v528_v63 = vrot.slane %v1713_v12, 2 }
  0x42   : > { %1384 = vmatmul.msk.f32.gmra.mxu1 %vm295_vm2, %v1734_v21  ;;  %v506_v21 = vrot.slane %v202_v1, 2  ;;  %v2008_v1 = vsel %vm497_vm3, %v528_v63, %v529_v0 }
  0x43   : > { %1402 = vmatmul.msk.f32.gmra.mxu2 %vm295_vm2, %v502_v27  ;;  %1420 = vmatmul.msk.f32.gmra.mxu3 %vm295_vm2, %v201_v49  ;;  %v534_v27 = vrot.slane %v1794_v43, 2 }
  0x44   : > { %v1894_v28 = vsel %vm497_vm3, %v504_v30, %v506_v21 }
  0x45   : > { %1438 = vmatmul.msk.f32.gmra.mxu0 %vm295_vm2, %v262_v14  ;;  %v2053_v45 = vsel %vm497_vm3, %v533_v25, %v534_v27 }
  0x4a   : > { %1385 = vmatmul.msk.f32.gmra.mxu1 %vm295_vm2, %v200_v48  ;;  %v1943_v48 = vsel %vm497_vm3, %v514_v46, %v516_v47  ;;  %v2058_v47 = vsel %vm252_vm1, %v749_v31, %v750_v32 }
  0x4b   : > { %1403 = vmatmul.msk.f32.gmra.mxu2 %vm295_vm2, %v1884_v18  ;;  %1421 = vmatmul.msk.f32.gmra.mxu3 %vm295_vm2, %v1698_v5 }
  0x4d   : > { %1439 = vmatmul.msk.f32.gmra.mxu0 %vm295_vm2, %v1728_v19 }
  0x52   : > { %1386 = vmatmul.msk.f32.gmra.mxu1 %vm295_vm2, %v201_v49  ;;  %v518_v49 = vrot.slane %v1704_v7, 2 }
  0x53   : > { %1404 = vmatmul.msk.f32.gmra.mxu2 %vm295_vm2, %v1894_v28  ;;  %1422 = vmatmul.msk.f32.gmra.mxu3 %vm295_vm2, %v1701_v6 }
  0x54   : > { %v1956_v51 = vsel %vm497_vm3, %v518_v49, %v519_v50  ;;  %v2065_v49 = vld [vmem:[%s1695_s8 + $0xd0] sm:$0x3]  ;;  %v536_v50 = vrot.slane %v1837_v62, 2 }
  0x55   : > { %1440 = vmatmul.msk.f32.gmra.mxu0 %vm295_vm2, %v1763_v33  ;;  %v752_v55 = vrot.slane %v2065_v49, 1 }
  0x56   : > { %v2078_v63 = vsel %vm497_vm3, %v534_v27, %v536_v50 }
  0x57   : > { %v2083_v62 = vsel %vm252_vm1, %v750_v32, %v752_v55 }
  0x58   : > { %2367 = vst [vmem:[#allocation4_spill] sm:$0xff] %v2083_v62 }
  0x5a   : > { %1387 = vmatmul.msk.f32.gmra.mxu1 %vm295_vm2, %v1698_v5 }
  0x5b   : > { %1405 = vmatmul.msk.f32.gmra.mxu2 %vm295_vm2, %v1906_v36  ;;  %1423 = vmatmul.msk.f32.gmra.mxu3 %vm295_vm2, %v1766_v34 }
  0x5d   : > { %1441 = vmatmul.msk.f32.gmra.mxu0 %vm295_vm2, %v1822_v57 }
  0x62   : > { %1388 = vmatmul.msk.f32.gmra.mxu1 %vm295_vm2, %v1701_v6 }
  0x63   : > { %1406 = vmatmul.msk.f32.gmra.mxu2 %vm295_vm2, %v1918_v44  ;;  %1424 = vmatmul.msk.f32.gmra.mxu3 %vm295_vm2, %v1769_v35 }
  0x65   : > { %1442 = vmatmul.msk.f32.gmra.mxu0 %vm295_vm2, %v1852_v8 }
  0x6a   : > { %1389 = vmatmul.msk.f32.gmra.mxu1 %vm295_vm2, %v1766_v34 }
  0x6b   : > { %1407 = vmatmul.msk.f32.gmra.mxu2 %vm295_vm2, %v1931_v17  ;;  %1425 = vmatmul.msk.f32.gmra.mxu3 %vm295_vm2, %v1704_v7 }
  0x6d   : > { %1443 = vmatmul.msk.f32.gmra.mxu0 %vm295_vm2, %v1740_v23 }
  0x72   : > { %1390 = vmatmul.msk.f32.gmra.mxu1 %vm295_vm2, %v1769_v35 }
  0x73   : > { %1408 = vmatmul.msk.f32.gmra.mxu2 %vm295_vm2, %v1943_v48  ;;  %1426 = vmatmul.msk.f32.gmra.mxu3 %vm295_vm2, %v1709_v10 }
  0x75   : > { %1444 = vmatmul.msk.f32.gmra.mxu0 %vm295_vm2, %v1775_v37 }
  0x7a   : > { %1391 = vmatmul.msk.f32.gmra.mxu1 %vm295_vm2, %v1704_v7 }
  0x7b   : > { %1409 = vmatmul.msk.f32.gmra.mxu2 %vm295_vm2, %v1956_v51  ;;  %1427 = vmatmul.msk.f32.gmra.mxu3 %vm295_vm2, %v1781_v39 }
  0x7d   : > { %1445 = vmatmul.msk.f32.gmra.mxu0 %vm295_vm2, %v1825_v58 }
  0x82   : > { %1392 = vmatmul.msk.f32.gmra.mxu1 %vm295_vm2, %v1709_v10 }
  0x83   : > { %1410 = vmatmul.msk.f32.gmra.mxu2 %vm295_vm2, %v1968_v53  ;;  %1428 = vmatmul.msk.f32.gmra.mxu3 %vm295_vm2, %v1784_v40 }
  0x85   : > { %1446 = vmatmul.msk.f32.gmra.mxu0 %vm295_vm2, %v1855_v9 }
  0x8a   : > { %1393 = vmatmul.msk.f32.gmra.mxu1 %vm295_vm2, %v1781_v39 }
  0x8b   : > { %1411 = vmatmul.msk.f32.gmra.mxu2 %vm295_vm2, %v1981_v20  ;;  %1429 = vmatmul.msk.f32.gmra.mxu3 %vm295_vm2, %v1713_v12 }
  0x8d   : > { %1447 = vmatmul.msk.f32.gmra.mxu0 %vm295_vm2, %v1743_v24 }
  0x92   : > { %1394 = vmatmul.msk.f32.gmra.mxu1 %vm295_vm2, %v1784_v40 }
  0x93   : > { %1412 = vmatmul.msk.f32.gmra.mxu2 %vm295_vm2, %v1993_v60  ;;  %1430 = vmatmul.msk.f32.gmra.mxu3 %vm295_vm2, %v1716_v13 }
  0x95   : > { %1448 = vmatmul.msk.f32.gmra.mxu0 %vm295_vm2, %v1778_v38 }
  0x97   : > { %v2005_v61 = vpop.f32.mrf.mxu1 }
  0x9a   : > { %1395 = vmatmul.msk.f32.gmra.mxu1 %vm295_vm2, %v1713_v12  ;;  %v349_v2 = vpop.f32.mrf.mxu0 }
  0x9b   : > { %1413 = vmatmul.msk.f32.gmra.mxu2 %vm295_vm2, %v2008_v1  ;;  %1431 = vmatmul.msk.f32.gmra.mxu3 %vm295_vm2, %v1791_v42 }
  0x9d   : > { %1449 = vmatmul.msk.f32.gmra.mxu0 %vm295_vm2, %v1828_v59 }
  0x9e   : > { %v2019_v4 = vpop.f32.mrf.mxu2  ;;  %v2021_v14 = vpop.f32.mrf.mxu3 }
  0x9f   : > { %v2023_v15 = vpop.f32.mrf.mxu1 }
  0xa2   : > { %1396 = vmatmul.msk.f32.gmra.mxu1 %vm295_vm2, %v1716_v13  ;;  %v352_v22 = vpop.f32.mrf.mxu0 }
  0xa3   : > { %1414 = vmatmul.msk.f32.gmra.mxu2 %vm295_vm2, %v2026_v16  ;;  %1432 = vmatmul.msk.f32.gmra.mxu3 %vm295_vm2, %v1794_v43 }
  0xa5   : > { %1450 = vmatmul.msk.f32.gmra.mxu0 %vm295_vm2, %v1858_v11 }
  0xa6   : > { %v2044_v30 = vpop.f32.mrf.mxu2  ;;  %v2046_v21 = vpop.f32.mrf.mxu3 }
  0xa7   : > { %2365 = vst [vmem:[#allocation2_spill] sm:$0xff] %v2046_v21  ;;  %v2050_v41 = vpop.f32.mrf.mxu1 }
  0xaa   : > { %1397 = vmatmul.msk.f32.gmra.mxu1 %vm295_vm2, %v1791_v42  ;;  %v355_v46 = vpop.f32.mrf.mxu0 }
  0xab   : > { %1415 = vmatmul.msk.f32.gmra.mxu2 %vm295_vm2, %v2053_v45  ;;  %1433 = vmatmul.msk.f32.gmra.mxu3 %vm295_vm2, %v2040_v29 }
  0xad   : > { %1451 = vmatmul.msk.f32.gmra.mxu0 %vm295_vm2, %v2058_v47 }
  0xae   : > { %v2070_v52 = vpop.f32.mrf.mxu2  ;;  %v2072_v54 = vpop.f32.mrf.mxu3 }
  0xaf   : > { %2366 = vst [vmem:[#allocation3_spill] sm:$0xff] %v2072_v54  ;;  %v2075_v56 = vpop.f32.mrf.mxu1 }
  0xb2   : > { %1398 = vmatmul.msk.f32.gmra.mxu1 %vm295_vm2, %v1794_v43  ;;  %v358_v0 = vpop.f32.mrf.mxu0 }
  0xb3   : > { %1416 = vmatmul.msk.f32.gmra.mxu2 %vm295_vm2, %v2078_v63  ;;  %1434 = vmatmul.msk.f32.gmra.mxu3 %vm295_vm2, %v2035_v26 }
  0xb5   : > { %1452 = vmatmul.msk.f32.gmra.mxu0 %vm295_vm2, %v2083_v62 }
  0xb6   : > { %v2091_v3 = vpop.f32.mrf.mxu2  ;;  %v2093_v25 = vpop.f32.mrf.mxu3 }
  0xb7   : > { %2368 = vst [vmem:[#allocation5_spill] sm:$0xff] %v2093_v25  ;;  %v449_v27 = vpop.f32.mrf.mxu1 }
  0xb8   : > { %v450_v32 = vadd.f32 %v449_v27, %v349_v2 }
  0xba   : > { %1455 = vmatmul.msk.f32.vlgmr.msra.gmra.mxu1 %vm295_vm2, %v1884_v18  ;;  %v780_v31 = vpop.f32.mrf.mxu0 }
  0xbb   : > { %1473 = vmatmul.msk.f32.vlgmr.msra.gmra.mxu2 %vm295_vm2, %v1698_v5  ;;  %1491 = vmatmul.msk.f32.vlgmr.msra.gmra.mxu3 %vm295_vm2, %v1728_v19 }
  0xbd   : > { %1509 = vmatmul.msk.f32.vlgmr.msra.gmra.mxu0 %vm295_vm2, %v1906_v36 }
  0xbe   : > { %v592_v50 = vpop.f32.mrf.mxu2  ;;  %v684_v55 = vpop.f32.mrf.mxu3 }
  0xbf   : > { %v640_v54 = vadd.f32 %v592_v50, %v450_v32  ;;  %v452_v21 = vpop.f32.mrf.mxu1 }
  0xc0   : > { %v453_v5 = vadd.f32 %v452_v21, %v352_v22 }
  0xc1   : > { %v732_v25 = vadd.f32 %v684_v55, %v640_v54 }
  0xc2   : > { %1456 = vmatmul.msk.f32.gmra.mxu1 %vm295_vm2, %v1894_v28  ;;  %v783_v18 = vpop.f32.mrf.mxu0 }
  0xc3   : > { %v2105_v62 = vadd.f32 %v780_v31, %v732_v25  ;;  %1474 = vmatmul.msk.f32.gmra.mxu2 %vm295_vm2, %v1701_v6  ;;  %1492 = vmatmul.msk.f32.gmra.mxu3 %vm295_vm2, %v1763_v33 }
  0xc5   : > { %1510 = vmatmul.msk.f32.gmra.mxu0 %vm295_vm2, %v1918_v44 }
  0xc6   : > { %v595_v19 = vpop.f32.mrf.mxu2  ;;  %v687_v2 = vpop.f32.mrf.mxu3 }
  0xc7   : > { %v641_v27 = vadd.f32 %v595_v19, %v453_v5  ;;  %v455_v54 = vpop.f32.mrf.mxu1 }
  0xc8   : > { %v456_v6 = vadd.f32 %v455_v54, %v355_v46 }
  0xc9   : > { %v733_v32 = vadd.f32 %v687_v2, %v641_v27 }
  0xca   : > { %1457 = vmatmul.msk.f32.gmra.mxu1 %vm295_vm2, %v1906_v36  ;;  %v786_v28 = vpop.f32.mrf.mxu0 }
  0xcb   : > { %v2115_v25 = vadd.f32 %v783_v18, %v733_v32  ;;  %1475 = vmatmul.msk.f32.gmra.mxu2 %vm295_vm2, %v1766_v34  ;;  %1493 = vmatmul.msk.f32.gmra.mxu3 %vm295_vm2, %v1822_v57 }
  0xcd   : > { %1511 = vmatmul.msk.f32.gmra.mxu0 %vm295_vm2, %v1931_v17 }
  0xce   : > { %v598_v33 = vpop.f32.mrf.mxu2  ;;  %v690_v22 = vpop.f32.mrf.mxu3 }
  0xcf   : > { %v642_v21 = vadd.f32 %v598_v33, %v456_v6  ;;  %v458_v31 = vpop.f32.mrf.mxu1 }
  0xd0   : > { %v459_v34 = vadd.f32 %v458_v31, %v358_v0 }
  0xd1   : > { %v734_v50 = vadd.f32 %v690_v22, %v642_v21 }
  0xd2   : > { %1458 = vmatmul.msk.f32.gmra.mxu1 %vm295_vm2, %v1918_v44  ;;  %v789_v36 = vpop.f32.mrf.mxu0 }
  0xd3   : > { %v2125_v55 = vadd.f32 %v786_v28, %v734_v50  ;;  %1476 = vmatmul.msk.f32.gmra.mxu2 %vm295_vm2, %v1769_v35  ;;  %1494 = vmatmul.msk.f32.gmra.mxu3 %vm295_vm2, %v1852_v8 }
  0xd5   : > { %1512 = vmatmul.msk.f32.gmra.mxu0 %vm295_vm2, %v1943_v48 }
  0xd6   : > { %v601_v57 = vpop.f32.mrf.mxu2  ;;  %v693_v46 = vpop.f32.mrf.mxu3 }
  0xd7   : > { %v643_v18 = vadd.f32 %v601_v57, %v459_v34  ;;  %v461_v5 = vpop.f32.mrf.mxu1 }
  0xd8   : > { %v462_v35 = vadd.f32 %v461_v5, %v2005_v61 }
  0xd9   : > { %v735_v19 = vadd.f32 %v693_v46, %v643_v18 }
  0xda   : > { %1459 = vmatmul.msk.f32.gmra.mxu1 %vm295_vm2, %v1931_v17  ;;  %v792_v44 = vpop.f32.mrf.mxu0 }
  0xdb   : > { %v2135_v2 = vadd.f32 %v789_v36, %v735_v19  ;;  %1477 = vmatmul.msk.f32.gmra.mxu2 %vm295_vm2, %v1704_v7  ;;  %1495 = vmatmul.msk.f32.gmra.mxu3 %vm295_vm2, %v1740_v23 }
  0xdd   : > { %1513 = vmatmul.msk.f32.gmra.mxu0 %vm295_vm2, %v1956_v51 }
  0xde   : > { %v604_v8 = vpop.f32.mrf.mxu2  ;;  %v696_v0 = vpop.f32.mrf.mxu3 }
  0xdf   : > { %v644_v27 = vadd.f32 %v604_v8, %v462_v35  ;;  %v464_v54 = vpop.f32.mrf.mxu1 }
  0xe0   : > { %v465_v7 = vadd.f32 %v464_v54, %v2023_v15 }
  0xe1   : > { %v736_v32 = vadd.f32 %v696_v0, %v644_v27 }
  0xe2   : > { %1460 = vmatmul.msk.f32.gmra.mxu1 %vm295_vm2, %v1943_v48  ;;  %v795_v17 = vpop.f32.mrf.mxu0 }
  0xe3   : > { %v2146_v28 = vadd.f32 %v792_v44, %v736_v32  ;;  %1478 = vmatmul.msk.f32.gmra.mxu2 %vm295_vm2, %v1709_v10  ;;  %1496 = vmatmul.msk.f32.gmra.mxu3 %vm295_vm2, %v1775_v37 }
  0xe5   : > { %1514 = vmatmul.msk.f32.gmra.mxu0 %vm295_vm2, %v1968_v53 }
  0xe6   : > { %v607_v23 = vpop.f32.mrf.mxu2  ;;  %v699_v61 = vpop.f32.mrf.mxu3 }
  0xe7   : > { %v645_v6 = vadd.f32 %v607_v23, %v465_v7  ;;  %v467_v33 = vpop.f32.mrf.mxu1 }
  0xe8   : > { %v468_v10 = vadd.f32 %v467_v33, %v2050_v41 }
  0xe9   : > { %v737_v22 = vadd.f32 %v699_v61, %v645_v6 }
  0xea   : > { %1461 = vmatmul.msk.f32.gmra.mxu1 %vm295_vm2, %v1956_v51  ;;  %v798_v48 = vpop.f32.mrf.mxu0 }
  0xeb   : > { %v2157_v21 = vadd.f32 %v795_v17, %v737_v22  ;;  %1479 = vmatmul.msk.f32.gmra.mxu2 %vm295_vm2, %v1781_v39  ;;  %1497 = vmatmul.msk.f32.gmra.mxu3 %vm295_vm2, %v1825_v58 }
  0xed   : > { %1515 = vmatmul.msk.f32.gmra.mxu0 %vm295_vm2, %v1981_v20 }
  0xee   : > { %v610_v37 = vpop.f32.mrf.mxu2  ;;  %v702_v15 = vpop.f32.mrf.mxu3 }
  0xef   : > { %v646_v31 = vadd.f32 %v610_v37, %v468_v10  ;;  %v470_v50 = vpop.f32.mrf.mxu1 }
  0xf0   : > { %v471_v39 = vadd.f32 %v470_v50, %v2075_v56 }
  0xf1   : > { %v738_v36 = vadd.f32 %v702_v15, %v646_v31  ;;  %v847_v31 = vrot.slane %v2065_v49, 2 }
  0xf2   : > { %1462 = vmatmul.msk.f32.gmra.mxu1 %vm295_vm2, %v1968_v53  ;;  %v801_v51 = vpop.f32.mrf.mxu0 }
  0xf3   : > { %v2168_v34 = vadd.f32 %v798_v48, %v738_v36  ;;  %1480 = vmatmul.msk.f32.gmra.mxu2 %vm295_vm2, %v1784_v40  ;;  %1498 = vmatmul.msk.f32.gmra.mxu3 %vm295_vm2, %v1855_v9 }
  0xf5   : > { %1516 = vmatmul.msk.f32.gmra.mxu0 %vm295_vm2, %v1993_v60 }
  0xf6   : > { %v613_v58 = vpop.f32.mrf.mxu2  ;;  %v705_v41 = vpop.f32.mrf.mxu3 }
  0xf7   : > { %v647_v57 = vadd.f32 %v613_v58, %v471_v39  ;;  %v473_v46 = vpop.f32.mrf.mxu1  ;;  %v225_v39 = vld [vmem:[%s1695_s8 + $0xe0] sm:$0xff] }
  0xf8   : > { %v474_v40 = vadd.f32 %v473_v46, %v2019_v4 }
  0xf9   : > { %v739_v18 = vadd.f32 %v705_v41, %v647_v57  ;;  %v1033_v41 = vrot.slane %v225_v39, 1  ;;  %v2370_v57 = vld [vmem:[#allocation2_spill] sm:$0xff] }
  0xfa   : > { %1463 = vmatmul.msk.f32.gmra.mxu1 %vm295_vm2, %v1981_v20  ;;  %v804_v53 = vpop.f32.mrf.mxu0 }
  0xfb   : > { %v2179_v5 = vadd.f32 %v801_v51, %v739_v18  ;;  %1481 = vmatmul.msk.f32.gmra.mxu2 %vm295_vm2, %v1713_v12  ;;  %1499 = vmatmul.msk.f32.gmra.mxu3 %vm295_vm2, %v1743_v24  ;;  %v224_v51 = vld [vmem:[%s1695_s8 + $0xd8] sm:$0xff] }
  0xfc   : > { %v1032_v49 = vrot.slane %v224_v51, 1 }
  0xfd   : > { %1517 = vmatmul.msk.f32.gmra.mxu0 %vm295_vm2, %v2008_v1 }
  0xfe   : > { %v616_v9 = vpop.f32.mrf.mxu2  ;;  %v708_v56 = vpop.f32.mrf.mxu3 }
  0xff   : > { %v648_v19 = vadd.f32 %v616_v9, %v474_v40  ;;  %v476_v44 = vpop.f32.mrf.mxu1  ;;  %v1128_v40 = vrot.slane %v225_v39, 2 }
 0x100   : > { %v477_v12 = vadd.f32 %v476_v44, %v2044_v30 }
 0x101   : > { %v740_v35 = vadd.f32 %v708_v56, %v648_v19  ;;  %v1034_v19 = vsel %vm252_vm1, %v1032_v49, %v1033_v41 }
 0x102   : > { %1464 = vmatmul.msk.f32.gmra.mxu1 %vm295_vm2, %v1993_v60  ;;  %v807_v20 = vpop.f32.mrf.mxu0 }
 0x103   : > { %v2190_v8 = vadd.f32 %v804_v53, %v740_v35  ;;  %1482 = vmatmul.msk.f32.gmra.mxu2 %vm295_vm2, %v1716_v13  ;;  %1500 = vmatmul.msk.f32.gmra.mxu3 %vm295_vm2, %v1778_v38  ;;  %v1127_v53 = vrot.slane %v224_v51, 2  ;;  %v226_v35 = vld [vmem:[%s1695_s8 + $0xe8] sm:$0x3] }
 0x105   : > { %1518 = vmatmul.msk.f32.gmra.mxu0 %vm295_vm2, %v2026_v16 }
 0x106   : > { %v619_v24 = vpop.f32.mrf.mxu2  ;;  %v711_v4 = vpop.f32.mrf.mxu3 }
 0x107   : > { %v649_v0 = vadd.f32 %v619_v24, %v477_v12  ;;  %v479_v27 = vpop.f32.mrf.mxu1  ;;  %v1035_v24 = vrot.slane %v226_v35, 1 }
 0x108   : > { %v480_v13 = vadd.f32 %v479_v27, %v2070_v52  ;;  %v845_v52 = vrot.slane %v2035_v26, 2 }
 0x109   : > { %v741_v54 = vadd.f32 %v711_v4, %v649_v0  ;;  %v2371_v4 = vld [vmem:[#allocation3_spill] sm:$0xff] }
 0x10a   : > { %1465 = vmatmul.msk.f32.gmra.mxu1 %vm295_vm2, %v2008_v1  ;;  %v810_v60 = vpop.f32.mrf.mxu0  ;;  %v848_v58 = vsel %vm497_vm3, %v845_v52, %v847_v31 }
 0x10b   : > { %v2201_v32 = vadd.f32 %v807_v20, %v741_v54  ;;  %1483 = vmatmul.msk.f32.gmra.mxu2 %vm295_vm2, %v1791_v42  ;;  %1501 = vmatmul.msk.f32.gmra.mxu3 %vm295_vm2, %v1828_v59  ;;  %v844_v59 = vrot.slane %v2040_v29, 2  ;;  %v1129_v20 = vsel %vm497_vm3, %v1127_v53, %v1128_v40 }
 0x10d   : > { %1519 = vmatmul.msk.f32.gmra.mxu0 %vm295_vm2, %v2053_v45 }
 0x10e   : > { %v622_v38 = vpop.f32.mrf.mxu2  ;;  %v714_v30 = vpop.f32.mrf.mxu3 }
 0x10f   : > { %v650_v17 = vadd.f32 %v622_v38, %v480_v13  ;;  %v482_v7 = vpop.f32.mrf.mxu1 }
 0x110   : > { %v483_v42 = vadd.f32 %v482_v7, %v2091_v3 }
 0x111   : > { %v742_v23 = vadd.f32 %v714_v30, %v650_v17  ;;  %v1036_v30 = vsel %vm252_vm1, %v1033_v41, %v1035_v24 }
 0x112   : > { %1466 = vmatmul.msk.f32.gmra.mxu1 %vm295_vm2, %v2026_v16  ;;  %v813_v1 = vpop.f32.mrf.mxu0 }
 0x113   : > { %v2212_v61 = vadd.f32 %v810_v60, %v742_v23  ;;  %1484 = vmatmul.msk.f32.gmra.mxu2 %vm295_vm2, %v1794_v43  ;;  %1502 = vmatmul.msk.f32.gmra.mxu3 %vm295_vm2, %v1858_v11  ;;  %v846_v11 = vsel %vm497_vm3, %v844_v59, %v845_v52  ;;  %v1130_v60 = vrot.slane %v226_v35, 2 }
 0x115   : > { %1520 = vmatmul.msk.f32.gmra.mxu0 %vm295_vm2, %v2078_v63  ;;  %v1131_v23 = vsel %vm497_vm3, %v1128_v40, %v1130_v60 }
 0x116   : > { %v625_v6 = vpop.f32.mrf.mxu2  ;;  %v717_v16 = vpop.f32.mrf.mxu3 }
 0x117   : > { %v651_v33 = vadd.f32 %v625_v6, %v483_v42  ;;  %v485_v22 = vpop.f32.mrf.mxu1  ;;  %v2372_v42 = vld [vmem:[#allocation5_spill] sm:$0xff] }
 0x118   : > { %v486_v10 = vadd.f32 %v485_v22, %v2021_v14  ;;  %v2369_v14 = vld [vmem:[#allocation4_spill] sm:$0xff] }
 0x119   : > { %v743_v48 = vadd.f32 %v717_v16, %v651_v33 }
 0x11a   : > { %1467 = vmatmul.msk.f32.gmra.mxu1 %vm295_vm2, %v2053_v45  ;;  %v816_v43 = vpop.f32.mrf.mxu0 }
 0x11b   : > { %v2226_v3 = vadd.f32 %v813_v1, %v743_v48  ;;  %1485 = vmatmul.msk.f32.gmra.mxu2 %vm295_vm2, %v2040_v29  ;;  %1503 = vmatmul.msk.f32.gmra.mxu3 %vm295_vm2, %v2058_v47 }
 0x11d   : > { %1521 = vmatmul.msk.f32.gmra.mxu0 %vm295_vm2, %v846_v11 }
 0x11e   : > { %v628_v37 = vpop.f32.mrf.mxu2  ;;  %v720_v15 = vpop.f32.mrf.mxu3 }
 0x11f   : > { %v652_v45 = vadd.f32 %v628_v37, %v486_v10  ;;  %v488_v50 = vpop.f32.mrf.mxu1 }
 0x120   : > { %v489_v46 = vadd.f32 %v488_v50, %v2370_v57  ;;  %v2275_v50 = vld [vmem:[%s2362_s2] ss:$0 sm:$0xff] }
 0x121   : > { %v744_v36 = vadd.f32 %v720_v15, %v652_v45 }
 0x122   : > { %1468 = vmatmul.msk.f32.gmra.mxu1 %vm295_vm2, %v2078_v63  ;;  %v819_v29 = vpop.f32.mrf.mxu0 }
 0x123   : > { %v2240_v47 = vadd.f32 %v816_v43, %v744_v36  ;;  %1486 = vmatmul.msk.f32.gmra.mxu2 %vm295_vm2, %v2035_v26  ;;  %1504 = vmatmul.msk.f32.gmra.mxu3 %vm295_vm2, %v2369_v14 }
 0x125   : > { %1522 = vmatmul.msk.f32.gmra.mxu0 %vm295_vm2, %v848_v58 }
 0x126   : > { %v631_v18 = vpop.f32.mrf.mxu2  ;;  %v723_v63 = vpop.f32.mrf.mxu3 }
 0x127   : > { %v653_v9 = vadd.f32 %v631_v18, %v489_v46  ;;  %v491_v56 = vpop.f32.mrf.mxu1 }
 0x128   : > { %v492_v0 = vadd.f32 %v491_v56, %v2371_v4 }
 0x129   : > { %v745_v44 = vadd.f32 %v723_v63, %v653_v9 }
 0x12a   : > { %1469 = vmatmul.msk.f32.gmra.mxu1 %vm295_vm2, %v846_v11  ;;  %v822_v26 = vpop.f32.mrf.mxu0 }
 0x12b   : > { %v2252_v12 = vadd.f32 %v819_v29, %v745_v44  ;;  %1487 = vmatmul.msk.f32.gmra.mxu2 %vm295_vm2, %v224_v51  ;;  %1505 = vmatmul.msk.f32.gmra.mxu3 %vm295_vm2, %v1034_v19 }
 0x12d   : > { %1523 = vmatmul.msk.f32.gmra.mxu0 %vm295_vm2, %v1129_v20 }
 0x12e   : > { %v634_v27 = vpop.f32.mrf.mxu2  ;;  %v726_v54 = vpop.f32.mrf.mxu3 }
 0x12f   : > { %v654_v13 = vadd.f32 %v634_v27, %v492_v0  ;;  %v494_v38 = vpop.f32.mrf.mxu1 }
 0x130   : > { %v495_v59 = vadd.f32 %v494_v38, %v2372_v42 }
 0x131   : > { %v746_v17 = vadd.f32 %v726_v54, %v654_v13 }
 0x132   : > { %1470 = vmatmul.msk.f32.gmra.mxu1 %vm295_vm2, %v848_v58  ;;  %v825_v7 = vpop.f32.mrf.mxu0 }
 0x133   : > { %v2262_v1 = vadd.f32 %v822_v26, %v746_v17  ;;  %1488 = vmatmul.msk.f32.gmra.mxu2 %vm295_vm2, %v225_v39  ;;  %1506 = vmatmul.msk.f32.gmra.mxu3 %vm295_vm2, %v1036_v30 }
 0x135   : > { %1524 = vmatmul.msk.f32.gmra.mxu0 %vm295_vm2, %v1131_v23 }
 0x136   : > { %v637_v52 = vpop.f32.mrf.mxu2  ;;  %v729_v6 = vpop.f32.mrf.mxu3 }
 0x137   : > { %v655_v16 = vadd.f32 %v637_v52, %v495_v59  ;;  %v875_v33 = vpop.f32.mrf.mxu1 }
 0x138   : > { %v923_v11 = vadd.f32 %v875_v33, %v2105_v62 }
 0x139   : > { %v747_v22 = vadd.f32 %v729_v6, %v655_v16 }
 0x13a   : > { %v1158_v48 = vpop.f32.mrf.mxu0 }
 0x13b   : > { %v2269_v43 = vadd.f32 %v825_v7, %v747_v22 }
 0x13e   : > { %v967_v10 = vpop.f32.mrf.mxu2  ;;  %v1063_v37 = vpop.f32.mrf.mxu3 }
 0x13f   : > { %v1015_v15 = vadd.f32 %v967_v10, %v923_v11  ;;  %v878_v31 = vpop.f32.mrf.mxu1 }
 0x140   : > { %v924_v39 = vadd.f32 %v878_v31, %v2115_v25 }
 0x141   : > { %v1111_v45 = vadd.f32 %v1063_v37, %v1015_v15 }
 0x142   : > { %v1161_v36 = vpop.f32.mrf.mxu0 }
 0x143   : > { %v1206_v51 = vadd.f32 %v1158_v48, %v1111_v45 }
 0x145   : > { %v1226_v29 = vadd.f32 %v2275_v50, %v1206_v51 }
 0x146   : > { %v970_v62 = vpop.f32.mrf.mxu2  ;;  %v1066_v58 = vpop.f32.mrf.mxu3 }
 0x147   : > { %v1242_v14 = vmax.f32 %v1226_v29, 0.0  ;;  %v1016_v49 = vadd.f32 %v970_v62, %v924_v39  ;;  %v881_v41 = vpop.f32.mrf.mxu1 }
 0x148   : > { %v925_v18 = vadd.f32 %v881_v41, %v2125_v55 }
 0x149   : > { %1259 = vst.msk [vmem:[%s2282_s30] sm:$0xff] %vm1258_vm4, %v1242_v14  ;;  %v1112_v57 = vadd.f32 %v1066_v58, %v1016_v49 }
 0x14a   : > { %v1164_v46 = vpop.f32.mrf.mxu0 }
 0x14b   : > { %v1207_v25 = vadd.f32 %v1161_v36, %v1112_v57 }
 0x14d   : > { %v1227_v63 = vadd.f32 %v2275_v50, %v1207_v25 }
 0x14e   : > { %v973_v53 = vpop.f32.mrf.mxu2  ;;  %v1069_v40 = vpop.f32.mrf.mxu3 }
 0x14f   : > { %v1243_v9 = vmax.f32 %v1227_v63, 0.0  ;;  %v1017_v56 = vadd.f32 %v973_v53, %v925_v18  ;;  %v884_v19 = vpop.f32.mrf.mxu1 }
 0x150   : > { %v926_v20 = vadd.f32 %v884_v19, %v2135_v2 }
 0x151   : > { %1260 = vst.msk [vmem:[%s2282_s30 + $0x8] sm:$0xff] %vm1258_vm4, %v1243_v9  ;;  %v1113_v44 = vadd.f32 %v1069_v40, %v1017_v56 }
 0x152   : > { %v1167_v35 = vpop.f32.mrf.mxu0 }
 0x153   : > { %v1208_v26 = vadd.f32 %v1164_v46, %v1113_v44 }
 0x155   : > { %v1228_v24 = vadd.f32 %v2275_v50, %v1208_v26 }
 0x156   : > { %v976_v4 = vpop.f32.mrf.mxu2  ;;  %v1072_v55 = vpop.f32.mrf.mxu3 }
 0x157   : > { %v1244_v0 = vmax.f32 %v1228_v24, 0.0  ;;  %v1018_v27 = vadd.f32 %v976_v4, %v926_v20  ;;  %v887_v54 = vpop.f32.mrf.mxu1 }
 0x158   : > { %v927_v30 = vadd.f32 %v887_v54, %v2146_v28 }
 0x159   : > { %1261 = vst.msk [vmem:[%s2282_s30 + $0x10] sm:$0xff] %vm1258_vm4, %v1244_v0  ;;  %v1114_v60 = vadd.f32 %v1072_v55, %v1018_v27 }
 0x15a   : > { %v1170_v13 = vpop.f32.mrf.mxu0 }
 0x15b   : > { %v1209_v38 = vadd.f32 %v1167_v35, %v1114_v60 }
 0x15d   : > { %v1229_v17 = vadd.f32 %v2275_v50, %v1209_v38 }
 0x15e   : > { %v979_v7 = vpop.f32.mrf.mxu2  ;;  %v1075_v2 = vpop.f32.mrf.mxu3 }
 0x15f   : > { %v1245_v23 = vmax.f32 %v1229_v17, 0.0  ;;  %v1019_v42 = vadd.f32 %v979_v7, %v927_v30  ;;  %v890_v59 = vpop.f32.mrf.mxu1 }
 0x160   : > { %v928_v33 = vadd.f32 %v890_v59, %v2157_v21 }
 0x161   : > { %1262 = vst.msk [vmem:[%s2282_s30 + $0x18] sm:$0xff] %vm1258_vm4, %v1245_v23  ;;  %v1115_v52 = vadd.f32 %v1075_v2, %v1019_v42 }
 0x162   : > { %v1173_v6 = vpop.f32.mrf.mxu0 }
 0x163   : > { %v1210_v16 = vadd.f32 %v1170_v13, %v1115_v52 }
 0x165   : > { %v1230_v22 = vadd.f32 %v2275_v50, %v1210_v16 }
 0x166   : > { %v982_v48 = vpop.f32.mrf.mxu2  ;;  %v1078_v28 = vpop.f32.mrf.mxu3 }
 0x167   : > { %v1246_v11 = vmax.f32 %v1230_v22, 0.0  ;;  %v1020_v10 = vadd.f32 %v982_v48, %v928_v33  ;;  %v893_v37 = vpop.f32.mrf.mxu1 }
 0x168   : > { %v929_v36 = vadd.f32 %v893_v37, %v2168_v34 }
 0x169   : > { %1263 = vst.msk [vmem:[%s2282_s30 + $0x20] sm:$0xff] %vm1258_vm4, %v1246_v11  ;;  %v1116_v15 = vadd.f32 %v1078_v28, %v1020_v10 }
 0x16a   : > { %v1176_v31 = vpop.f32.mrf.mxu0 }
 0x16b   : > { %v1211_v45 = vadd.f32 %v1173_v6, %v1116_v15 }
 0x16d   : > { %v1231_v51 = vadd.f32 %v2275_v50, %v1211_v45 }
 0x16e   : > { %v985_v39 = vpop.f32.mrf.mxu2  ;;  %v1081_v21 = vpop.f32.mrf.mxu3 }
 0x16f   : > { %v1247_v29 = vmax.f32 %v1231_v51, 0.0  ;;  %v1021_v62 = vadd.f32 %v985_v39, %v929_v36  ;;  %v896_v58 = vpop.f32.mrf.mxu1 }
 0x170   : > { %v930_v57 = vadd.f32 %v896_v58, %v2179_v5 }
 0x171   : > { %1264 = vst.msk [vmem:[%s2282_s30 + $0x28] sm:$0xff] %vm1258_vm4, %v1247_v29  ;;  %v1117_v14 = vadd.f32 %v1081_v21, %v1021_v62 }
 0x172   : > { %v1179_v49 = vpop.f32.mrf.mxu0 }
 0x173   : > { %v1212_v41 = vadd.f32 %v1176_v31, %v1117_v14 }
 0x175   : > { %v1232_v46 = vadd.f32 %v2275_v50, %v1212_v41 }
 0x176   : > { %v988_v25 = vpop.f32.mrf.mxu2  ;;  %v1084_v34 = vpop.f32.mrf.mxu3 }
 0x177   : > { %v1248_v18 = vmax.f32 %v1232_v46, 0.0  ;;  %v1022_v63 = vadd.f32 %v988_v25, %v930_v57  ;;  %v899_v53 = vpop.f32.mrf.mxu1 }
 0x178   : > { %v931_v19 = vadd.f32 %v899_v53, %v2190_v8 }
 0x179   : > { %1265 = vst.msk [vmem:[%s2282_s30 + $0x30] sm:$0xff] %vm1258_vm4, %v1248_v18  ;;  %v1118_v40 = vadd.f32 %v1084_v34, %v1022_v63 }
 0x17a   : > { %v1182_v9 = vpop.f32.mrf.mxu0 }
 0x17b   : > { %v1213_v56 = vadd.f32 %v1179_v49, %v1118_v40 }
 0x17d   : > { %v1233_v44 = vadd.f32 %v2275_v50, %v1213_v56 }
 0x17e   : > { %v991_v35 = vpop.f32.mrf.mxu2  ;;  %v1087_v5 = vpop.f32.mrf.mxu3 }
 0x17f   : > { %v1249_v26 = vmax.f32 %v1233_v44, 0.0  ;;  %v1023_v20 = vadd.f32 %v991_v35, %v931_v19  ;;  %v902_v24 = vpop.f32.mrf.mxu1 }
 0x180   : > { %v932_v27 = vadd.f32 %v902_v24, %v2201_v32 }
 0x181   : > { %1266 = vst.msk [vmem:[%s2282_s30 + $0x38] sm:$0xff] %vm1258_vm4, %v1249_v26  ;;  %v1119_v4 = vadd.f32 %v1087_v5, %v1023_v20 }
 0x182   : > { %v1185_v55 = vpop.f32.mrf.mxu0 }
 0x183   : > { %v1214_v0 = vadd.f32 %v1182_v9, %v1119_v4 }
 0x185   : > { %v1234_v54 = vadd.f32 %v2275_v50, %v1214_v0 }
 0x186   : > { %v994_v60 = vpop.f32.mrf.mxu2  ;;  %v1090_v8 = vpop.f32.mrf.mxu3 }
 0x187   : > { %v1250_v13 = vmax.f32 %v1234_v54, 0.0  ;;  %v1024_v38 = vadd.f32 %v994_v60, %v932_v27  ;;  %v905_v30 = vpop.f32.mrf.mxu1 }
 0x188   : > { %v933_v23 = vadd.f32 %v905_v30, %v2212_v61 }
 0x189   : > { %1267 = vst.msk [vmem:[%s2282_s30 + $0x40] sm:$0xff] %vm1258_vm4, %v1250_v13  ;;  %v1120_v17 = vadd.f32 %v1090_v8, %v1024_v38 }
 0x18a   : > { %v1188_v7 = vpop.f32.mrf.mxu0 }
 0x18b   : > { %v1215_v2 = vadd.f32 %v1185_v55, %v1120_v17 }
 0x18d   : > { %v1235_v42 = vadd.f32 %v2275_v50, %v1215_v2 }
 0x18e   : > { %v997_v59 = vpop.f32.mrf.mxu2  ;;  %v1093_v32 = vpop.f32.mrf.mxu3 }
 0x18f   : > { %v1251_v52 = vmax.f32 %v1235_v42, 0.0  ;;  %v1025_v6 = vadd.f32 %v997_v59, %v933_v23  ;;  %v908_v16 = vpop.f32.mrf.mxu1 }
 0x190   : > { %v934_v28 = vadd.f32 %v908_v16, %v2226_v3 }
 0x191   : > { %1268 = vst.msk [vmem:[%s2282_s30 + $0x48] sm:$0xff] %vm1258_vm4, %v1251_v52  ;;  %v1121_v33 = vadd.f32 %v1093_v32, %v1025_v6 }
 0x192   : > { %v1191_v22 = vpop.f32.mrf.mxu0 }
 0x193   : > { %v1216_v48 = vadd.f32 %v1188_v7, %v1121_v33 }
 0x195   : > { %v1236_v11 = vadd.f32 %v2275_v50, %v1216_v48 }
 0x196   : > { %v1000_v10 = vpop.f32.mrf.mxu2  ;;  %v1096_v61 = vpop.f32.mrf.mxu3 }
 0x197   : > { %v1252_v37 = vmax.f32 %v1236_v11, 0.0  ;;  %v1026_v15 = vadd.f32 %v1000_v10, %v934_v28  ;;  %v911_v31 = vpop.f32.mrf.mxu1 }
 0x198   : > { %v935_v39 = vadd.f32 %v911_v31, %v2240_v47 }
 0x199   : > { %1269 = vst.msk [vmem:[%s2282_s30 + $0x50] sm:$0xff] %vm1258_vm4, %v1252_v37  ;;  %v1122_v45 = vadd.f32 %v1096_v61, %v1026_v15 }
 0x19a   : > { %v1194_v36 = vpop.f32.mrf.mxu0 }
 0x19b   : > { %v1217_v51 = vadd.f32 %v1191_v22, %v1122_v45 }
 0x19d   : > { %v1237_v21 = vadd.f32 %v2275_v50, %v1217_v51 }
 0x19e   : > { %v1003_v29 = vpop.f32.mrf.mxu2  ;;  %v1099_v3 = vpop.f32.mrf.mxu3 }
 0x19f   : > { %v1253_v62 = vmax.f32 %v1237_v21, 0.0  ;;  %v1027_v58 = vadd.f32 %v1003_v29, %v935_v39  ;;  %v914_v14 = vpop.f32.mrf.mxu1 }
 0x1a0   : > { %v936_v46 = vadd.f32 %v914_v14, %v2252_v12 }
 0x1a1   : > { %1270 = vst.msk [vmem:[%s2282_s30 + $0x58] sm:$0xff] %vm1258_vm4, %v1253_v62  ;;  %v1123_v49 = vadd.f32 %v1099_v3, %v1027_v58 }
 0x1a2   : > { %v1197_v57 = vpop.f32.mrf.mxu0 }
 0x1a3   : > { %v1218_v41 = vadd.f32 %v1194_v36, %v1123_v49 }
 0x1a5   : > { %v1238_v25 = vadd.f32 %v2275_v50, %v1218_v41 }
 0x1a6   : > { %v1006_v34 = vpop.f32.mrf.mxu2  ;;  %v1102_v47 = vpop.f32.mrf.mxu3 }
 0x1a7   : > { %v1254_v18 = vmax.f32 %v1238_v25, 0.0  ;;  %v1028_v63 = vadd.f32 %v1006_v34, %v936_v46  ;;  %v917_v53 = vpop.f32.mrf.mxu1 }
 0x1a8   : > { %v937_v56 = vadd.f32 %v917_v53, %v2262_v1 }
 0x1a9   : > { %1271 = vst.msk [vmem:[%s2282_s30 + $0x60] sm:$0xff] %vm1258_vm4, %v1254_v18  ;;  %v1124_v40 = vadd.f32 %v1102_v47, %v1028_v63 }
 0x1aa   : > { %v1200_v44 = vpop.f32.mrf.mxu0 }
 0x1ab   : > { %v1219_v9 = vadd.f32 %v1197_v57, %v1124_v40 }
 0x1ad   : > { %v1239_v19 = vadd.f32 %v2275_v50, %v1219_v9 }
 0x1ae   : > { %v1009_v35 = vpop.f32.mrf.mxu2  ;;  %v1105_v12 = vpop.f32.mrf.mxu3 }
 0x1af   : > { %v1255_v5 = vmax.f32 %v1239_v19, 0.0  ;;  %v1029_v26 = vadd.f32 %v1009_v35, %v937_v56  ;;  %v920_v24 = vpop.f32.mrf.mxu1 }
 0x1b0   : > { %v938_v55 = vadd.f32 %v920_v24, %v2269_v43 }
 0x1b1   : > { %1272 = vst.msk [vmem:[%s2282_s30 + $0x68] sm:$0xff] %vm1258_vm4, %v1255_v5  ;;  %v1125_v20 = vadd.f32 %v1105_v12, %v1029_v26 }
 0x1b2   : > { %v1203_v8 = vpop.f32.mrf.mxu0 }
 0x1b3   : > { %v1220_v4 = vadd.f32 %v1200_v44, %v1125_v20 }
 0x1b5   : > { %v1240_v0 = vadd.f32 %v2275_v50, %v1220_v4 }
 0x1b6   : > { %v1012_v27 = vpop.f32.mrf.mxu2  ;;  %v1108_v1 = vpop.f32.mrf.mxu3 }
 0x1b7   : > { %v1256_v54 = vmax.f32 %v1240_v0, 0.0  ;;  %v1030_v60 = vadd.f32 %v1012_v27, %v938_v55 }
 0x1b9   : > { %1273 = vst.msk [vmem:[%s2282_s30 + $0x70] sm:$0xff] %vm1258_vm4, %v1256_v54  ;;  %v1126_v13 = vadd.f32 %v1108_v1, %v1030_v60 }
 0x1bb   : > { %v1221_v38 = vadd.f32 %v1203_v8, %v1126_v13 }
 0x1bd   : > { %v1241_v30 = vadd.f32 %v2275_v50, %v1221_v38 }
 0x1bf   : > { %v1257_v17 = vmax.f32 %v1241_v30, 0.0 }
 0x1c1   : > { %1274 = vst.msk [vmem:[%s2282_s30 + $0x78] sm:$0xff] %vm1258_vm4, %v1257_v17 }
 0x1c2 PF: > { %s13_s16 = sadd.s32 1, %s1610_s16   ;;  %s2373_s12 = smov %s1602_s14 }
 0x1c3   : > { %p10_p7 = scmp.ge.s32.totalorder %s13_s16, 6   ;;  %s2374_s13 = smov %s1606_s15 }
 0x1c4   : > { %s2375_s14 = smov %s2378_s17  ;;  %s2376_s15 = smov %s2382_s18 }
 0x1c5   :  { %12 = sbr.rel (!%p10_p7) target bundleno = 3 (0x3), region = 71 }

// kernel: self_taught_forward.3
= control target key start
LH: loop header
LB: loop body
LE: loop exit
PB: predicated region body
PF: predicated region fallthrough
CT: control target
= control target key end

     0   :  { %s1592_s0 = inlined_call_operand.vmem [shape: f32[2,2048], index: 0, kind: input, shape index: {}]   ;;  %s1593_s1 = inlined_call_operand.vmem [shape: f32[2048,32], index: 1, kind: input, shape index: {}]   ;;  %s1594_s2 = inlined_call_operand.vmem [shape: f32[1,32], index: 2, kind: input, shape index: {}]   ;;  %s1595_s3 = inlined_call_operand.vmem [shape: f32[32,128], index: 3, kind: input, shape index: {}]   ;;  %s1596_s4 = inlined_call_operand.vmem [shape: f32[1,128], index: 4, kind: input, shape index: {}]   ;;  %s1597_s5 = inlined_call_operand.hbm [shape: f32[2,128], index: 5, kind: output, shape index: {}]  }
   0x1   :  { %v40_v0 = vld [vmem:[%s1593_s1 + $0x78] sm:$0xff]  ;;  %v39_v2 = vld [vmem:[%s1593_s1 + $0x70] sm:$0xff]  ;;  %v38_v6 = vld [vmem:[%s1593_s1 + $0x68] sm:$0xff] }
   0x2   :  { %v72_v1 = vld [vmem:[%s1593_s1 + $0x178] sm:$0xff]  ;;  %326 = vmatpush.msra.mxu0 %v40_v0  ;;  %v71_v4 = vld [vmem:[%s1593_s1 + $0x170] sm:$0xff]  ;;  %v70_v8 = vld [vmem:[%s1593_s1 + $0x168] sm:$0xff] }
   0x3   :  { %366 = vmatpush.msra.mxu2 %v72_v1  ;;  %v56_v3 = vld [vmem:[%s1593_s1 + $0xf8] sm:$0xff]  ;;  %v55_v7 = vld [vmem:[%s1593_s1 + $0xf0] sm:$0xff]  ;;  %v54_v10 = vld [vmem:[%s1593_s1 + $0xe8] sm:$0xff] }
   0x4   :  { %v88_v5 = vld [vmem:[%s1593_s1 + $0x1f8] sm:$0xff]  ;;  %346 = vmatpush.msra.mxu1 %v56_v3  ;;  %327 = vmatpush.msra.mxu0 %v39_v2  ;;  %v87_v9 = vld [vmem:[%s1593_s1 + $0x1f0] sm:$0xff]  ;;  %v37_v11 = vld [vmem:[%s1593_s1 + $0x60] sm:$0xff] }
   0x5   :  { %386 = vmatpush.msra.mxu3 %v88_v5  ;;  %367 = vmatpush.msra.mxu2 %v71_v4  ;;  %v69_v12 = vld [vmem:[%s1593_s1 + $0x160] sm:$0xff]  ;;  %v86_v13 = vld [vmem:[%s1593_s1 + $0x1e8] sm:$0xff]  ;;  %v36_v16 = vld [vmem:[%s1593_s1 + $0x58] sm:$0xff] }
   0x6   :  { %347 = vmatpush.msra.mxu1 %v55_v7  ;;  %328 = vmatpush.msra.mxu0 %v38_v6  ;;  %v53_v14 = vld [vmem:[%s1593_s1 + $0xe0] sm:$0xff]  ;;  %v68_v17 = vld [vmem:[%s1593_s1 + $0x158] sm:$0xff]  ;;  %v35_v20 = vld [vmem:[%s1593_s1 + $0x50] sm:$0xff] }
   0x7   :  { %387 = vmatpush.msra.mxu3 %v87_v9  ;;  %368 = vmatpush.msra.mxu2 %v70_v8  ;;  %v85_v15 = vld [vmem:[%s1593_s1 + $0x1e0] sm:$0xff]  ;;  %v52_v18 = vld [vmem:[%s1593_s1 + $0xd8] sm:$0xff]  ;;  %v67_v21 = vld [vmem:[%s1593_s1 + $0x150] sm:$0xff] }
   0x8   :  { %348 = vmatpush.msra.mxu1 %v54_v10  ;;  %329 = vmatpush.msra.mxu0 %v37_v11  ;;  %v84_v19 = vld [vmem:[%s1593_s1 + $0x1d8] sm:$0xff]  ;;  %v51_v22 = vld [vmem:[%s1593_s1 + $0xd0] sm:$0xff]  ;;  %v34_v24 = vld [vmem:[%s1593_s1 + $0x48] sm:$0xff] }
   0x9   :  { %388 = vmatpush.msra.mxu3 %v86_v13  ;;  %369 = vmatpush.msra.mxu2 %v69_v12  ;;  %v83_v23 = vld [vmem:[%s1593_s1 + $0x1d0] sm:$0xff]  ;;  %v66_v25 = vld [vmem:[%s1593_s1 + $0x148] sm:$0xff]  ;;  %v33_v28 = vld [vmem:[%s1593_s1 + $0x40] sm:$0xff] }
   0xa   :  { %349 = vmatpush.msra.mxu1 %v53_v14  ;;  %330 = vmatpush.msra.mxu0 %v36_v16  ;;  %v50_v26 = vld [vmem:[%s1593_s1 + $0xc8] sm:$0xff]  ;;  %v65_v29 = vld [vmem:[%s1593_s1 + $0x140] sm:$0xff]  ;;  %v32_v32 = vld [vmem:[%s1593_s1 + $0x38] sm:$0xff] }
   0xb   :  { %389 = vmatpush.msra.mxu3 %v85_v15  ;;  %370 = vmatpush.msra.mxu2 %v68_v17  ;;  %v82_v27 = vld [vmem:[%s1593_s1 + $0x1c8] sm:$0xff]  ;;  %v49_v30 = vld [vmem:[%s1593_s1 + $0xc0] sm:$0xff]  ;;  %v64_v33 = vld [vmem:[%s1593_s1 + $0x138] sm:$0xff] }
   0xc   :  { %350 = vmatpush.msra.mxu1 %v52_v18  ;;  %331 = vmatpush.msra.mxu0 %v35_v20  ;;  %v81_v31 = vld [vmem:[%s1593_s1 + $0x1c0] sm:$0xff]  ;;  %v48_v34 = vld [vmem:[%s1593_s1 + $0xb8] sm:$0xff]  ;;  %v31_v36 = vld [vmem:[%s1593_s1 + $0x30] sm:$0xff] }
   0xd   :  { %390 = vmatpush.msra.mxu3 %v84_v19  ;;  %371 = vmatpush.msra.mxu2 %v67_v21  ;;  %v80_v35 = vld [vmem:[%s1593_s1 + $0x1b8] sm:$0xff]  ;;  %v63_v37 = vld [vmem:[%s1593_s1 + $0x130] sm:$0xff]  ;;  %v30_v40 = vld [vmem:[%s1593_s1 + $0x28] sm:$0xff] }
   0xe   :  { %351 = vmatpush.msra.mxu1 %v51_v22  ;;  %332 = vmatpush.msra.mxu0 %v34_v24  ;;  %v47_v38 = vld [vmem:[%s1593_s1 + $0xb0] sm:$0xff]  ;;  %v62_v41 = vld [vmem:[%s1593_s1 + $0x128] sm:$0xff]  ;;  %v29_v44 = vld [vmem:[%s1593_s1 + $0x20] sm:$0xff] }
   0xf   :  { %391 = vmatpush.msra.mxu3 %v83_v23  ;;  %372 = vmatpush.msra.mxu2 %v66_v25  ;;  %v79_v39 = vld [vmem:[%s1593_s1 + $0x1b0] sm:$0xff]  ;;  %v46_v42 = vld [vmem:[%s1593_s1 + $0xa8] sm:$0xff]  ;;  %v61_v45 = vld [vmem:[%s1593_s1 + $0x120] sm:$0xff] }
  0x10   :  { %352 = vmatpush.msra.mxu1 %v50_v26  ;;  %333 = vmatpush.msra.mxu0 %v33_v28  ;;  %v78_v43 = vld [vmem:[%s1593_s1 + $0x1a8] sm:$0xff]  ;;  %v45_v46 = vld [vmem:[%s1593_s1 + $0xa0] sm:$0xff]  ;;  %v28_v48 = vld [vmem:[%s1593_s1 + $0x18] sm:$0xff] }
  0x11   :  { %392 = vmatpush.msra.mxu3 %v82_v27  ;;  %373 = vmatpush.msra.mxu2 %v65_v29  ;;  %v77_v47 = vld [vmem:[%s1593_s1 + $0x1a0] sm:$0xff]  ;;  %v60_v49 = vld [vmem:[%s1593_s1 + $0x118] sm:$0xff]  ;;  %v27_v52 = vld [vmem:[%s1593_s1 + $0x10] sm:$0xff] }
  0x12   :  { %353 = vmatpush.msra.mxu1 %v49_v30  ;;  %334 = vmatpush.msra.mxu0 %v32_v32  ;;  %v44_v50 = vld [vmem:[%s1593_s1 + $0x98] sm:$0xff]  ;;  %v59_v53 = vld [vmem:[%s1593_s1 + $0x110] sm:$0xff]  ;;  %v26_v56 = vld [vmem:[%s1593_s1 + $0x8] sm:$0xff] }
  0x13   :  { %393 = vmatpush.msra.mxu3 %v81_v31  ;;  %374 = vmatpush.msra.mxu2 %v64_v33  ;;  %v76_v51 = vld [vmem:[%s1593_s1 + $0x198] sm:$0xff]  ;;  %v43_v54 = vld [vmem:[%s1593_s1 + $0x90] sm:$0xff]  ;;  %v58_v57 = vld [vmem:[%s1593_s1 + $0x108] sm:$0xff] }
  0x14   :  { %354 = vmatpush.msra.mxu1 %v48_v34  ;;  %335 = vmatpush.msra.mxu0 %v31_v36  ;;  %v75_v55 = vld [vmem:[%s1593_s1 + $0x190] sm:$0xff]  ;;  %v42_v58 = vld [vmem:[%s1593_s1 + $0x88] sm:$0xff]  ;;  %v25_v60 = vld [vmem:[%s1593_s1] sm:$0xff] }
  0x15   :  { %394 = vmatpush.msra.mxu3 %v80_v35  ;;  %375 = vmatpush.msra.mxu2 %v63_v37  ;;  %v74_v59 = vld [vmem:[%s1593_s1 + $0x188] sm:$0xff]  ;;  %v57_v61 = vld [vmem:[%s1593_s1 + $0x100] sm:$0xff]  ;;  %v104_v62 = vld [vmem:[%s1593_s1 + $0x278] sm:$0xff] }
  0x16   :  { %355 = vmatpush.msra.mxu1 %v47_v38  ;;  %336 = vmatpush.msra.mxu0 %v30_v40  ;;  %v136_v63 = vld [vmem:[%s1593_s1 + $0x378] sm:$0xff]  ;;  %v41_v0 = vld [vmem:[%s1593_s1 + $0x80] sm:$0xff]  ;;  %v103_v2 = vld [vmem:[%s1593_s1 + $0x270] sm:$0xff] }
  0x17   :  { %395 = vmatpush.msra.mxu3 %v79_v39  ;;  %376 = vmatpush.msra.mxu2 %v62_v41  ;;  %v73_v1 = vld [vmem:[%s1593_s1 + $0x180] sm:$0xff]  ;;  %v120_v3 = vld [vmem:[%s1593_s1 + $0x2f8] sm:$0xff]  ;;  %v135_v4 = vld [vmem:[%s1593_s1 + $0x370] sm:$0xff] }
  0x18   :  { %356 = vmatpush.msra.mxu1 %v46_v42  ;;  %337 = vmatpush.msra.mxu0 %v29_v44  ;;  %v152_v5 = vld [vmem:[%s1593_s1 + $0x3f8] sm:$0xff]  ;;  %v102_v6 = vld [vmem:[%s1593_s1 + $0x268] sm:$0xff]  ;;  %v119_v7 = vld [vmem:[%s1593_s1 + $0x2f0] sm:$0xff] }
  0x19   :  { %396 = vmatpush.msra.mxu3 %v78_v43  ;;  %377 = vmatpush.msra.mxu2 %v61_v45  ;;  %v134_v8 = vld [vmem:[%s1593_s1 + $0x368] sm:$0xff]  ;;  %v151_v9 = vld [vmem:[%s1593_s1 + $0x3f0] sm:$0xff]  ;;  %v101_v10 = vld [vmem:[%s1593_s1 + $0x260] sm:$0xff] }
  0x1a   :  { %357 = vmatpush.msra.mxu1 %v45_v46  ;;  %338 = vmatpush.msra.mxu0 %v28_v48  ;;  %v118_v11 = vld [vmem:[%s1593_s1 + $0x2e8] sm:$0xff]  ;;  %v133_v12 = vld [vmem:[%s1593_s1 + $0x360] sm:$0xff]  ;;  %v100_v14 = vld [vmem:[%s1593_s1 + $0x258] sm:$0xff] }
  0x1b   :  { %397 = vmatpush.msra.mxu3 %v77_v47  ;;  %378 = vmatpush.msra.mxu2 %v60_v49  ;;  %v150_v13 = vld [vmem:[%s1593_s1 + $0x3e8] sm:$0xff]  ;;  %v117_v15 = vld [vmem:[%s1593_s1 + $0x2e0] sm:$0xff]  ;;  %v132_v16 = vld [vmem:[%s1593_s1 + $0x358] sm:$0xff] }
  0x1c   :  { %358 = vmatpush.msra.mxu1 %v44_v50  ;;  %339 = vmatpush.msra.mxu0 %v27_v52  ;;  %v149_v17 = vld [vmem:[%s1593_s1 + $0x3e0] sm:$0xff]  ;;  %v99_v18 = vld [vmem:[%s1593_s1 + $0x250] sm:$0xff]  ;;  %v116_v19 = vld [vmem:[%s1593_s1 + $0x2d8] sm:$0xff] }
  0x1d   :  { %398 = vmatpush.msra.mxu3 %v76_v51  ;;  %379 = vmatpush.msra.mxu2 %v59_v53  ;;  %v131_v20 = vld [vmem:[%s1593_s1 + $0x350] sm:$0xff]  ;;  %v148_v21 = vld [vmem:[%s1593_s1 + $0x3d8] sm:$0xff]  ;;  %v98_v22 = vld [vmem:[%s1593_s1 + $0x248] sm:$0xff] }
  0x1e   :  { %359 = vmatpush.msra.mxu1 %v43_v54  ;;  %340 = vmatpush.msra.mxu0 %v26_v56  ;;  %v115_v23 = vld [vmem:[%s1593_s1 + $0x2d0] sm:$0xff]  ;;  %v130_v24 = vld [vmem:[%s1593_s1 + $0x348] sm:$0xff]  ;;  %v21_v26 = vld [vmem:[%s1592_s0] sm:$0xff] }
  0x1f   :  { %399 = vmatpush.msra.mxu3 %v75_v55  ;;  %380 = vmatpush.msra.mxu2 %v58_v57  ;;  %v147_v25 = vld [vmem:[%s1593_s1 + $0x3d0] sm:$0xff]  ;;  %v97_v27 = vld [vmem:[%s1593_s1 + $0x240] sm:$0xff]  ;;  %v114_v28 = vld [vmem:[%s1593_s1 + $0x2c8] sm:$0xff]  ;;  %289 = vst [vmem:[#allocation1] ss:$4 sm:$0xff] %v21_v26 }
  0x20   :  { %360 = vmatpush.msra.mxu1 %v42_v58  ;;  %341 = vmatpush.msra.mxu0 %v25_v60  ;;  %v129_v29 = vld [vmem:[%s1593_s1 + $0x340] sm:$0xff]  ;;  %v146_v30 = vld [vmem:[%s1593_s1 + $0x3c8] sm:$0xff]  ;;  %v96_v31 = vld [vmem:[%s1593_s1 + $0x238] sm:$0xff] }
  0x21   :  { %400 = vmatpush.msra.mxu3 %v74_v59  ;;  %381 = vmatpush.msra.mxu2 %v57_v61  ;;  %v113_v32 = vld [vmem:[%s1593_s1 + $0x2c0] sm:$0xff]  ;;  %v128_v33 = vld [vmem:[%s1593_s1 + $0x338] sm:$0xff]  ;;  %v95_v35 = vld [vmem:[%s1593_s1 + $0x230] sm:$0xff] }
  0x22   :  { %406 = vmatpush.msrb.mxu0 %v104_v62  ;;  %361 = vmatpush.msra.mxu1 %v41_v0  ;;  %v145_v34 = vld [vmem:[%s1593_s1 + $0x3c0] sm:$0xff]  ;;  %v112_v36 = vld [vmem:[%s1593_s1 + $0x2b8] sm:$0xff]  ;;  %v127_v37 = vld [vmem:[%s1593_s1 + $0x330] sm:$0xff] }
  0x23   :  { %446 = vmatpush.msrb.mxu2 %v136_v63  ;;  %401 = vmatpush.msra.mxu3 %v73_v1  ;;  %v144_v38 = vld [vmem:[%s1593_s1 + $0x3b8] sm:$0xff]  ;;  %v94_v39 = vld [vmem:[%s1593_s1 + $0x228] sm:$0xff]  ;;  %v111_v40 = vld [vmem:[%s1593_s1 + $0x2b0] sm:$0xff] }
  0x24   :  { %407 = vmatpush.msrb.mxu0 %v103_v2  ;;  %426 = vmatpush.msrb.mxu1 %v120_v3  ;;  %v126_v41 = vld [vmem:[%s1593_s1 + $0x328] sm:$0xff]  ;;  %v143_v42 = vld [vmem:[%s1593_s1 + $0x3b0] sm:$0xff]  ;;  %v93_v44 = vld [vmem:[%s1593_s1 + $0x220] sm:$0xff] }
  0x25   :  { %447 = vmatpush.msrb.mxu2 %v135_v4  ;;  %466 = vmatpush.msrb.mxu3 %v152_v5  ;;  %v22_v43 = vld [vmem:[%s1592_s0 + $0x8] sm:$0xff]  ;;  %v23_v46 = vld [vmem:[%s1592_s0 + $0x10] sm:$0xff]  ;;  %v125_v47 = vld [vmem:[%s1593_s1 + $0x320] sm:$0xff] }
  0x26   :  { %408 = vmatpush.msrb.mxu0 %v102_v6  ;;  %427 = vmatpush.msrb.mxu1 %v119_v7  ;;  %v110_v45 = vld [vmem:[%s1593_s1 + $0x2a8] sm:$0xff]  ;;  %291 = vst [vmem:[#allocation1 + $0x20] ss:$4 sm:$0xff] %v22_v43  ;;  %v292_v48 = vld.sshfl [vmem:[#allocation1] sm:$0xff pattern:$0x73625140] }
  0x27   :  { %448 = vmatpush.msrb.mxu2 %v134_v8  ;;  %467 = vmatpush.msrb.mxu3 %v151_v9  ;;  %v294_v49 = vld.sshfl [vmem:[#allocation1 + $0x10] sm:$0xff pattern:$0x73625140]  ;;  %v1109_v50 = vld.sshfl [vmem:[#allocation1 + $0x8] sm:$0xff pattern:$0x73625140] }
  0x28   :  { %409 = vmatpush.msrb.mxu0 %v101_v10  ;;  %428 = vmatpush.msrb.mxu1 %v118_v11  ;;  %v1111_v51 = vld.sshfl [vmem:[#allocation1 + $0x18] sm:$0xff pattern:$0x73625140]  ;;  %v142_v52 = vld [vmem:[%s1593_s1 + $0x3a8] sm:$0xff]  ;;  %v109_v54 = vld [vmem:[%s1593_s1 + $0x2a0] sm:$0xff] }
  0x29   :  { %449 = vmatpush.msrb.mxu2 %v133_v12  ;;  %468 = vmatpush.msrb.mxu3 %v150_v13  ;;  %v92_v53 = vld [vmem:[%s1593_s1 + $0x218] sm:$0xff]  ;;  %300 = vst [vmem:[#allocation1] ss:$4 sm:$0xff] %v23_v46  ;;  %v141_v56 = vld [vmem:[%s1593_s1 + $0x3a0] sm:$0xff]  ;;  %v91_v57 = vld [vmem:[%s1593_s1 + $0x210] sm:$0xff] }
  0x2a   :  { %410 = vmatpush.msrb.mxu0 %v100_v14  ;;  %429 = vmatpush.msrb.mxu1 %v117_v15  ;;  %v124_v55 = vld [vmem:[%s1593_s1 + $0x318] sm:$0xff]  ;;  %v123_v59 = vld [vmem:[%s1593_s1 + $0x310] sm:$0xff]  ;;  %v90_v61 = vld [vmem:[%s1593_s1 + $0x208] sm:$0xff] }
  0x2b   :  { %450 = vmatpush.msrb.mxu2 %v132_v16  ;;  %469 = vmatpush.msrb.mxu3 %v149_v17  ;;  %v108_v58 = vld [vmem:[%s1593_s1 + $0x298] sm:$0xff]  ;;  %v107_v62 = vld [vmem:[%s1593_s1 + $0x290] sm:$0xff]  ;;  %v122_v4 = vld [vmem:[%s1593_s1 + $0x308] sm:$0xff] }
  0x2c   :  { %411 = vmatpush.msrb.mxu0 %v99_v18  ;;  %430 = vmatpush.msrb.mxu1 %v116_v19  ;;  %v140_v60 = vld [vmem:[%s1593_s1 + $0x398] sm:$0xff]  ;;  %v139_v5 = vld [vmem:[%s1593_s1 + $0x390] sm:$0xff]  ;;  %v89_v6 = vld [vmem:[%s1593_s1 + $0x200] sm:$0xff] }
  0x2d   :  { %451 = vmatpush.msrb.mxu2 %v131_v20  ;;  %470 = vmatpush.msrb.mxu3 %v148_v21  ;;  %v24_v63 = vld [vmem:[%s1592_s0 + $0x18] sm:$0xff]  ;;  %v1149_v0 = vld.sshfl [vmem:[#allocation1 + $0x30] sm:$0xff pattern:$0x73625140]  ;;  %v106_v7 = vld [vmem:[%s1593_s1 + $0x288] sm:$0xff] }
  0x2e   :  { %412 = vmatpush.msrb.mxu0 %v98_v22  ;;  %431 = vmatpush.msrb.mxu1 %v115_v23  ;;  %v1151_v1 = vld.sshfl [vmem:[#allocation1 + $0x20] sm:$0xff pattern:$0x73625140]  ;;  %v1153_v2 = vld.sshfl [vmem:[#allocation1 + $0x38] sm:$0xff pattern:$0x73625140] }
  0x2f   :  { %452 = vmatpush.msrb.mxu2 %v130_v24  ;;  %471 = vmatpush.msrb.mxu3 %v147_v25  ;;  %v1155_v3 = vld.sshfl [vmem:[#allocation1 + $0x28] sm:$0xff pattern:$0x73625140]  ;;  %v121_v8 = vld [vmem:[%s1593_s1 + $0x300] sm:$0xff]  ;;  %v168_v10 = vld [vmem:[%s1593_s1 + $0x478] sm:$0xff] }
  0x30   :  { %413 = vmatpush.msrb.mxu0 %v97_v27  ;;  %432 = vmatpush.msrb.mxu1 %v114_v28  ;;  %301 = vst [vmem:[#allocation1 + $0x20] ss:$4 sm:$0xff] %v24_v63  ;;  %v138_v9 = vld [vmem:[%s1593_s1 + $0x388] sm:$0xff]  ;;  %v200_v11 = vld [vmem:[%s1593_s1 + $0x578] sm:$0xff]  ;;  %v105_v12 = vld [vmem:[%s1593_s1 + $0x280] sm:$0xff] }
  0x31   :  { %453 = vmatpush.msrb.mxu2 %v129_v29  ;;  %472 = vmatpush.msrb.mxu3 %v146_v30  ;;  %v137_v13 = vld [vmem:[%s1593_s1 + $0x380] sm:$0xff]  ;;  %v167_v14 = vld [vmem:[%s1593_s1 + $0x470] sm:$0xff]  ;;  %v184_v15 = vld [vmem:[%s1593_s1 + $0x4f8] sm:$0xff] }
  0x32   :  { %414 = vmatpush.msrb.mxu0 %v96_v31  ;;  %433 = vmatpush.msrb.mxu1 %v113_v32  ;;  %v199_v16 = vld [vmem:[%s1593_s1 + $0x570] sm:$0xff]  ;;  %v216_v17 = vld [vmem:[%s1593_s1 + $0x5f8] sm:$0xff]  ;;  %v166_v18 = vld [vmem:[%s1593_s1 + $0x468] sm:$0xff] }
  0x33   :  { %454 = vmatpush.msrb.mxu2 %v128_v33  ;;  %473 = vmatpush.msrb.mxu3 %v145_v34  ;;  %v183_v19 = vld [vmem:[%s1593_s1 + $0x4f0] sm:$0xff]  ;;  %v198_v20 = vld [vmem:[%s1593_s1 + $0x568] sm:$0xff]  ;;  %v165_v22 = vld [vmem:[%s1593_s1 + $0x460] sm:$0xff] }
  0x34   :  { %415 = vmatpush.msrb.mxu0 %v95_v35  ;;  %434 = vmatpush.msrb.mxu1 %v112_v36  ;;  %v215_v21 = vld [vmem:[%s1593_s1 + $0x5f0] sm:$0xff]  ;;  %v182_v23 = vld [vmem:[%s1593_s1 + $0x4e8] sm:$0xff]  ;;  %v197_v24 = vld [vmem:[%s1593_s1 + $0x560] sm:$0xff] }
  0x35   :  { %455 = vmatpush.msrb.mxu2 %v127_v37  ;;  %474 = vmatpush.msrb.mxu3 %v144_v38  ;;  %v214_v25 = vld [vmem:[%s1593_s1 + $0x5e8] sm:$0xff]  ;;  %v164_v26 = vld [vmem:[%s1593_s1 + $0x458] sm:$0xff]  ;;  %v181_v27 = vld [vmem:[%s1593_s1 + $0x4e0] sm:$0xff] }
  0x36   :  { %416 = vmatpush.msrb.mxu0 %v94_v39  ;;  %435 = vmatpush.msrb.mxu1 %v111_v40  ;;  %v196_v28 = vld [vmem:[%s1593_s1 + $0x558] sm:$0xff]  ;;  %v213_v29 = vld [vmem:[%s1593_s1 + $0x5e0] sm:$0xff] }
  0x37   :  { %456 = vmatpush.msrb.mxu2 %v126_v41  ;;  %475 = vmatpush.msrb.mxu3 %v143_v42 }
  0x38   :  { %417 = vmatpush.msrb.mxu0 %v93_v44  ;;  %436 = vmatpush.msrb.mxu1 %v110_v45 }
  0x39   :  { %457 = vmatpush.msrb.mxu2 %v125_v47  ;;  %476 = vmatpush.msrb.mxu3 %v142_v52 }
  0x3a   :  { %418 = vmatpush.msrb.mxu0 %v92_v53  ;;  %437 = vmatpush.msrb.mxu1 %v109_v54 }
  0x3b   :  { %458 = vmatpush.msrb.mxu2 %v124_v55  ;;  %477 = vmatpush.msrb.mxu3 %v141_v56 }
  0x3c   :  { %419 = vmatpush.msrb.mxu0 %v91_v57  ;;  %438 = vmatpush.msrb.mxu1 %v108_v58 }
  0x3d   :  { %459 = vmatpush.msrb.mxu2 %v123_v59  ;;  %478 = vmatpush.msrb.mxu3 %v140_v60 }
  0x3e   :  { %420 = vmatpush.msrb.mxu0 %v90_v61  ;;  %439 = vmatpush.msrb.mxu1 %v107_v62 }
  0x3f   :  { %460 = vmatpush.msrb.mxu2 %v122_v4  ;;  %479 = vmatpush.msrb.mxu3 %v139_v5 }
  0x40   :  { %421 = vmatpush.msrb.mxu0 %v89_v6  ;;  %440 = vmatpush.msrb.mxu1 %v106_v7 }
  0x41   :  { %461 = vmatpush.msrb.mxu2 %v121_v8  ;;  %480 = vmatpush.msrb.mxu3 %v138_v9 }
  0x42   :  { %342 = vmatmul.f32.vlgmr.msra.gmra.mxu0 %v292_v48  ;;  %382 = vmatmul.f32.vlgmr.msra.gmra.mxu2 %v294_v49 }
  0x43   :  { %486 = vmatpush.msra.mxu0 %v168_v10  ;;  %526 = vmatpush.msra.mxu2 %v200_v11 }
  0x44   :  { %441 = vmatpush.msrb.mxu1 %v105_v12  ;;  %481 = vmatpush.msrb.mxu3 %v137_v13 }
  0x45   :  { %362 = vmatmul.f32.vlgmr.msra.gmra.mxu1 %v1109_v50  ;;  %402 = vmatmul.f32.vlgmr.msra.gmra.mxu3 %v1111_v51 }
  0x46   :  { %487 = vmatpush.msra.mxu0 %v167_v14  ;;  %506 = vmatpush.msra.mxu1 %v184_v15 }
  0x47   :  { %527 = vmatpush.msra.mxu2 %v199_v16  ;;  %546 = vmatpush.msra.mxu3 %v216_v17 }
  0x48   :  { %488 = vmatpush.msra.mxu0 %v166_v18  ;;  %507 = vmatpush.msra.mxu1 %v183_v19 }
  0x49   :  { %528 = vmatpush.msra.mxu2 %v198_v20  ;;  %547 = vmatpush.msra.mxu3 %v215_v21 }
  0x4a   :  { %489 = vmatpush.msra.mxu0 %v165_v22  ;;  %508 = vmatpush.msra.mxu1 %v182_v23 }
  0x4b   :  { %529 = vmatpush.msra.mxu2 %v197_v24  ;;  %548 = vmatpush.msra.mxu3 %v214_v25 }
  0x4c   :  { %10 = vsyncpa [#allocation3], 0  ;;  %462 = vmatmul.f32.vlgmr.msrb.gmra.mxu2 %v1149_v0  ;;  %490 = vmatpush.msra.mxu0 %v164_v26  ;;  %v163_v30 = vld [vmem:[%s1593_s1 + $0x450] sm:$0xff]  ;;  %v180_v31 = vld [vmem:[%s1593_s1 + $0x4d8] sm:$0xff]  ;;  %vm654_vm0 = vcmask 261120   ;;  %vm678_vm1 = vcmask 1041408  }
  0x4d   :  { %509 = vmatpush.msra.mxu1 %v181_v27  ;;  %530 = vmatpush.msra.mxu2 %v196_v28  ;;  %v195_v32 = vld [vmem:[%s1593_s1 + $0x550] sm:$0xff]  ;;  %v212_v33 = vld [vmem:[%s1593_s1 + $0x5d8] sm:$0xff]  ;;  %v162_v34 = vld [vmem:[%s1593_s1 + $0x448] sm:$0xff]  ;;  %s742_s11 = smov [#allocation2]  }
  0x4e   :  { %549 = vmatpush.msra.mxu3 %v213_v29  ;;  %422 = vmatmul.f32.vlgmr.msrb.gmra.mxu0 %v1151_v1  ;;  %v179_v35 = vld [vmem:[%s1593_s1 + $0x4d0] sm:$0xff]  ;;  %v194_v36 = vld [vmem:[%s1593_s1 + $0x548] sm:$0xff]  ;;  %v161_v38 = vld [vmem:[%s1593_s1 + $0x440] sm:$0xff]  ;;  %s697_s12 = sshll.u32 %s742_s11, 4  ;;  %s698_s12 = int_to_ptr.vmem [resolvable:$true] %s697_s12 }
  0x4f   :  { %482 = vmatmul.f32.vlgmr.msrb.gmra.mxu3 %v1153_v2  ;;  %491 = vmatpush.msra.mxu0 %v163_v30  ;;  %v211_v37 = vld [vmem:[%s1593_s1 + $0x5d0] sm:$0xff]  ;;  %v178_v39 = vld [vmem:[%s1593_s1 + $0x4c8] sm:$0xff]  ;;  %v193_v40 = vld [vmem:[%s1593_s1 + $0x540] sm:$0xff] }
  0x50   :  { %510 = vmatpush.msra.mxu1 %v180_v31  ;;  %531 = vmatpush.msra.mxu2 %v195_v32  ;;  %v210_v41 = vld [vmem:[%s1593_s1 + $0x5c8] sm:$0xff]  ;;  %v160_v42 = vld [vmem:[%s1593_s1 + $0x438] sm:$0xff]  ;;  %v177_v43 = vld [vmem:[%s1593_s1 + $0x4c0] sm:$0xff] }
  0x51   :  { %550 = vmatpush.msra.mxu3 %v212_v33  ;;  %442 = vmatmul.f32.vlgmr.msrb.gmra.mxu1 %v1155_v3  ;;  %v192_v44 = vld [vmem:[%s1593_s1 + $0x538] sm:$0xff]  ;;  %v209_v45 = vld [vmem:[%s1593_s1 + $0x5c0] sm:$0xff]  ;;  %v159_v46 = vld [vmem:[%s1593_s1 + $0x430] sm:$0xff] }
  0x52   :  { %492 = vmatpush.msra.mxu0 %v162_v34  ;;  %511 = vmatpush.msra.mxu1 %v179_v35  ;;  %v176_v47 = vld [vmem:[%s1593_s1 + $0x4b8] sm:$0xff]  ;;  %v191_v48 = vld [vmem:[%s1593_s1 + $0x530] sm:$0xff]  ;;  %v158_v50 = vld [vmem:[%s1593_s1 + $0x428] sm:$0xff] }
  0x53   :  { %532 = vmatpush.msra.mxu2 %v194_v36  ;;  %551 = vmatpush.msra.mxu3 %v211_v37  ;;  %v208_v49 = vld [vmem:[%s1593_s1 + $0x5b8] sm:$0xff]  ;;  %v175_v51 = vld [vmem:[%s1593_s1 + $0x4b0] sm:$0xff]  ;;  %v190_v52 = vld [vmem:[%s1593_s1 + $0x528] sm:$0xff] }
  0x54   :  { %493 = vmatpush.msra.mxu0 %v161_v38  ;;  %512 = vmatpush.msra.mxu1 %v178_v39  ;;  %v207_v53 = vld [vmem:[%s1593_s1 + $0x5b0] sm:$0xff]  ;;  %v157_v54 = vld [vmem:[%s1593_s1 + $0x420] sm:$0xff]  ;;  %v174_v55 = vld [vmem:[%s1593_s1 + $0x4a8] sm:$0xff] }
  0x55   :  { %533 = vmatpush.msra.mxu2 %v193_v40  ;;  %552 = vmatpush.msra.mxu3 %v210_v41  ;;  %v189_v56 = vld [vmem:[%s1593_s1 + $0x520] sm:$0xff]  ;;  %v206_v57 = vld [vmem:[%s1593_s1 + $0x5a8] sm:$0xff]  ;;  %v156_v58 = vld [vmem:[%s1593_s1 + $0x418] sm:$0xff] }
  0x56   :  { %494 = vmatpush.msra.mxu0 %v160_v42  ;;  %513 = vmatpush.msra.mxu1 %v177_v43  ;;  %v173_v59 = vld [vmem:[%s1593_s1 + $0x4a0] sm:$0xff]  ;;  %v188_v60 = vld [vmem:[%s1593_s1 + $0x518] sm:$0xff]  ;;  %v155_v62 = vld [vmem:[%s1593_s1 + $0x410] sm:$0xff] }
  0x57   :  { %534 = vmatpush.msra.mxu2 %v192_v44  ;;  %553 = vmatpush.msra.mxu3 %v209_v45  ;;  %v205_v61 = vld [vmem:[%s1593_s1 + $0x5a0] sm:$0xff]  ;;  %v172_v63 = vld [vmem:[%s1593_s1 + $0x498] sm:$0xff]  ;;  %v187_v0 = vld [vmem:[%s1593_s1 + $0x510] sm:$0xff] }
  0x58   :  { %495 = vmatpush.msra.mxu0 %v159_v46  ;;  %514 = vmatpush.msra.mxu1 %v176_v47  ;;  %v204_v1 = vld [vmem:[%s1593_s1 + $0x598] sm:$0xff]  ;;  %v154_v2 = vld [vmem:[%s1593_s1 + $0x408] sm:$0xff]  ;;  %v171_v3 = vld [vmem:[%s1593_s1 + $0x490] sm:$0xff] }
  0x59   :  { %535 = vmatpush.msra.mxu2 %v191_v48  ;;  %554 = vmatpush.msra.mxu3 %v208_v49  ;;  %v186_v4 = vld [vmem:[%s1593_s1 + $0x508] sm:$0xff]  ;;  %v203_v5 = vld [vmem:[%s1593_s1 + $0x590] sm:$0xff]  ;;  %v153_v6 = vld [vmem:[%s1593_s1 + $0x400] sm:$0xff] }
  0x5a   :  { %496 = vmatpush.msra.mxu0 %v158_v50  ;;  %515 = vmatpush.msra.mxu1 %v175_v51  ;;  %v170_v7 = vld [vmem:[%s1593_s1 + $0x488] sm:$0xff]  ;;  %v185_v8 = vld [vmem:[%s1593_s1 + $0x500] sm:$0xff]  ;;  %v304_v11 = vld.sshfl [vmem:[#allocation1 + $0x10] sm:$0xff pattern:$0x73625140] }
  0x5b   :  { %536 = vmatpush.msra.mxu2 %v190_v52  ;;  %555 = vmatpush.msra.mxu3 %v207_v53  ;;  %v202_v9 = vld [vmem:[%s1593_s1 + $0x588] sm:$0xff]  ;;  %v302_v10 = vld.sshfl [vmem:[#allocation1] sm:$0xff pattern:$0x73625140]  ;;  %v232_v12 = vld [vmem:[%s1593_s1 + $0x678] sm:$0xff] }
  0x5c   :  { %497 = vmatpush.msra.mxu0 %v157_v54  ;;  %516 = vmatpush.msra.mxu1 %v174_v55  ;;  %v264_v13 = vld [vmem:[%s1593_s1 + $0x778] sm:$0xff]  ;;  %v169_v14 = vld [vmem:[%s1593_s1 + $0x480] sm:$0xff]  ;;  %v303_v16 = vld.sshfl [vmem:[#allocation1 + $0x8] sm:$0xff pattern:$0x73625140] }
  0x5d   :  { %537 = vmatpush.msra.mxu2 %v189_v56  ;;  %556 = vmatpush.msra.mxu3 %v206_v57  ;;  %v201_v15 = vld [vmem:[%s1593_s1 + $0x580] sm:$0xff]  ;;  %v305_v17 = vld.sshfl [vmem:[#allocation1 + $0x18] sm:$0xff pattern:$0x73625140]  ;;  %v231_v18 = vld [vmem:[%s1593_s1 + $0x670] sm:$0xff] }
  0x5e   :  { %498 = vmatpush.msra.mxu0 %v156_v58  ;;  %517 = vmatpush.msra.mxu1 %v173_v59  ;;  %v248_v19 = vld [vmem:[%s1593_s1 + $0x6f8] sm:$0xff]  ;;  %v263_v20 = vld [vmem:[%s1593_s1 + $0x770] sm:$0xff]  ;;  %v230_v22 = vld [vmem:[%s1593_s1 + $0x668] sm:$0xff] }
  0x5f   :  { %538 = vmatpush.msra.mxu2 %v188_v60  ;;  %557 = vmatpush.msra.mxu3 %v205_v61  ;;  %v280_v21 = vld [vmem:[%s1593_s1 + $0x7f8] sm:$0xff]  ;;  %v247_v23 = vld [vmem:[%s1593_s1 + $0x6f0] sm:$0xff]  ;;  %v262_v24 = vld [vmem:[%s1593_s1 + $0x768] sm:$0xff] }
  0x60   :  { %499 = vmatpush.msra.mxu0 %v155_v62  ;;  %518 = vmatpush.msra.mxu1 %v172_v63  ;;  %v279_v25 = vld [vmem:[%s1593_s1 + $0x7f0] sm:$0xff]  ;;  %v229_v26 = vld [vmem:[%s1593_s1 + $0x660] sm:$0xff]  ;;  %v246_v27 = vld [vmem:[%s1593_s1 + $0x6e8] sm:$0xff] }
  0x61   :  { %539 = vmatpush.msra.mxu2 %v187_v0  ;;  %558 = vmatpush.msra.mxu3 %v204_v1  ;;  %v261_v28 = vld [vmem:[%s1593_s1 + $0x760] sm:$0xff]  ;;  %v278_v29 = vld [vmem:[%s1593_s1 + $0x7e8] sm:$0xff]  ;;  %v228_v30 = vld [vmem:[%s1593_s1 + $0x658] sm:$0xff] }
  0x62   :  { %500 = vmatpush.msra.mxu0 %v154_v2  ;;  %519 = vmatpush.msra.mxu1 %v171_v3  ;;  %v245_v31 = vld [vmem:[%s1593_s1 + $0x6e0] sm:$0xff]  ;;  %v260_v32 = vld [vmem:[%s1593_s1 + $0x758] sm:$0xff]  ;;  %v227_v34 = vld [vmem:[%s1593_s1 + $0x650] sm:$0xff] }
  0x63   :  { %540 = vmatpush.msra.mxu2 %v186_v4  ;;  %559 = vmatpush.msra.mxu3 %v203_v5  ;;  %v277_v33 = vld [vmem:[%s1593_s1 + $0x7e0] sm:$0xff]  ;;  %v244_v35 = vld [vmem:[%s1593_s1 + $0x6d8] sm:$0xff]  ;;  %v259_v36 = vld [vmem:[%s1593_s1 + $0x750] sm:$0xff] }
  0x64   :  { %501 = vmatpush.msra.mxu0 %v153_v6  ;;  %520 = vmatpush.msra.mxu1 %v170_v7  ;;  %v276_v37 = vld [vmem:[%s1593_s1 + $0x7d8] sm:$0xff]  ;;  %v226_v38 = vld [vmem:[%s1593_s1 + $0x648] sm:$0xff]  ;;  %v243_v39 = vld [vmem:[%s1593_s1 + $0x6d0] sm:$0xff] }
  0x65   :  { %541 = vmatpush.msra.mxu2 %v185_v8  ;;  %560 = vmatpush.msra.mxu3 %v202_v9  ;;  %v258_v40 = vld [vmem:[%s1593_s1 + $0x748] sm:$0xff]  ;;  %v275_v41 = vld [vmem:[%s1593_s1 + $0x7d0] sm:$0xff]  ;;  %v225_v42 = vld [vmem:[%s1593_s1 + $0x640] sm:$0xff] }
  0x66   :  { %502 = vmatmul.f32.vlgmr.msra.gmra.mxu0 %v302_v10  ;;  %542 = vmatmul.f32.vlgmr.msra.gmra.mxu2 %v304_v11  ;;  %v242_v43 = vld [vmem:[%s1593_s1 + $0x6c8] sm:$0xff]  ;;  %v257_v44 = vld [vmem:[%s1593_s1 + $0x740] sm:$0xff]  ;;  %v224_v46 = vld [vmem:[%s1593_s1 + $0x638] sm:$0xff] }
  0x67   :  { %566 = vmatpush.msrb.mxu0 %v232_v12  ;;  %606 = vmatpush.msrb.mxu2 %v264_v13  ;;  %v274_v45 = vld [vmem:[%s1593_s1 + $0x7c8] sm:$0xff]  ;;  %v241_v47 = vld [vmem:[%s1593_s1 + $0x6c0] sm:$0xff]  ;;  %v256_v48 = vld [vmem:[%s1593_s1 + $0x738] sm:$0xff] }
  0x68   :  { %521 = vmatpush.msra.mxu1 %v169_v14  ;;  %561 = vmatpush.msra.mxu3 %v201_v15  ;;  %v273_v49 = vld [vmem:[%s1593_s1 + $0x7c0] sm:$0xff]  ;;  %v223_v50 = vld [vmem:[%s1593_s1 + $0x630] sm:$0xff]  ;;  %v240_v51 = vld [vmem:[%s1593_s1 + $0x6b8] sm:$0xff] }
  0x69   :  { %522 = vmatmul.f32.vlgmr.msra.gmra.mxu1 %v303_v16  ;;  %562 = vmatmul.f32.vlgmr.msra.gmra.mxu3 %v305_v17  ;;  %v255_v52 = vld [vmem:[%s1593_s1 + $0x730] sm:$0xff]  ;;  %v272_v53 = vld [vmem:[%s1593_s1 + $0x7b8] sm:$0xff]  ;;  %v222_v54 = vld [vmem:[%s1593_s1 + $0x628] sm:$0xff] }
  0x6a   :  { %567 = vmatpush.msrb.mxu0 %v231_v18  ;;  %586 = vmatpush.msrb.mxu1 %v248_v19  ;;  %v239_v55 = vld [vmem:[%s1593_s1 + $0x6b0] sm:$0xff]  ;;  %v254_v56 = vld [vmem:[%s1593_s1 + $0x728] sm:$0xff]  ;;  %v221_v58 = vld [vmem:[%s1593_s1 + $0x620] sm:$0xff] }
  0x6b   :  { %607 = vmatpush.msrb.mxu2 %v263_v20  ;;  %626 = vmatpush.msrb.mxu3 %v280_v21  ;;  %v271_v57 = vld [vmem:[%s1593_s1 + $0x7b0] sm:$0xff]  ;;  %v238_v59 = vld [vmem:[%s1593_s1 + $0x6a8] sm:$0xff]  ;;  %v253_v60 = vld [vmem:[%s1593_s1 + $0x720] sm:$0xff] }
  0x6c   :  { %568 = vmatpush.msrb.mxu0 %v230_v22  ;;  %587 = vmatpush.msrb.mxu1 %v247_v23  ;;  %v270_v61 = vld [vmem:[%s1593_s1 + $0x7a8] sm:$0xff]  ;;  %v220_v62 = vld [vmem:[%s1593_s1 + $0x618] sm:$0xff]  ;;  %v237_v63 = vld [vmem:[%s1593_s1 + $0x6a0] sm:$0xff] }
  0x6d   :  { %608 = vmatpush.msrb.mxu2 %v262_v24  ;;  %627 = vmatpush.msrb.mxu3 %v279_v25  ;;  %v252_v0 = vld [vmem:[%s1593_s1 + $0x718] sm:$0xff]  ;;  %v269_v1 = vld [vmem:[%s1593_s1 + $0x7a0] sm:$0xff]  ;;  %v219_v2 = vld [vmem:[%s1593_s1 + $0x610] sm:$0xff] }
  0x6e   :  { %569 = vmatpush.msrb.mxu0 %v229_v26  ;;  %588 = vmatpush.msrb.mxu1 %v246_v27  ;;  %v236_v3 = vld [vmem:[%s1593_s1 + $0x698] sm:$0xff]  ;;  %v251_v4 = vld [vmem:[%s1593_s1 + $0x710] sm:$0xff]  ;;  %v218_v6 = vld [vmem:[%s1593_s1 + $0x608] sm:$0xff] }
  0x6f   :  { %609 = vmatpush.msrb.mxu2 %v261_v28  ;;  %628 = vmatpush.msrb.mxu3 %v278_v29  ;;  %v268_v5 = vld [vmem:[%s1593_s1 + $0x798] sm:$0xff]  ;;  %v235_v7 = vld [vmem:[%s1593_s1 + $0x690] sm:$0xff]  ;;  %v250_v8 = vld [vmem:[%s1593_s1 + $0x708] sm:$0xff] }
  0x70   :  { %570 = vmatpush.msrb.mxu0 %v228_v30  ;;  %589 = vmatpush.msrb.mxu1 %v245_v31  ;;  %v267_v9 = vld [vmem:[%s1593_s1 + $0x790] sm:$0xff]  ;;  %v217_v10 = vld [vmem:[%s1593_s1 + $0x600] sm:$0xff]  ;;  %v234_v11 = vld [vmem:[%s1593_s1 + $0x688] sm:$0xff] }
  0x71   :  { %610 = vmatpush.msrb.mxu2 %v260_v32  ;;  %629 = vmatpush.msrb.mxu3 %v277_v33  ;;  %v249_v12 = vld [vmem:[%s1593_s1 + $0x700] sm:$0xff]  ;;  %v266_v13 = vld [vmem:[%s1593_s1 + $0x788] sm:$0xff]  ;;  %v308_v15 = vld.sshfl [vmem:[#allocation1 + $0x30] sm:$0xff pattern:$0x73625140] }
  0x72   :  { %571 = vmatpush.msrb.mxu0 %v227_v34  ;;  %590 = vmatpush.msrb.mxu1 %v244_v35  ;;  %v306_v14 = vld.sshfl [vmem:[#allocation1 + $0x20] sm:$0xff pattern:$0x73625140]  ;;  %v307_v18 = vld.sshfl [vmem:[#allocation1 + $0x28] sm:$0xff pattern:$0x73625140] }
  0x73   :  { %611 = vmatpush.msrb.mxu2 %v259_v36  ;;  %630 = vmatpush.msrb.mxu3 %v276_v37  ;;  %v233_v16 = vld [vmem:[%s1593_s1 + $0x680] sm:$0xff]  ;;  %v309_v19 = vld.sshfl [vmem:[#allocation1 + $0x38] sm:$0xff pattern:$0x73625140]  ;;  %v648_v30 = vld [vmem:[%s1595_s3 + $0x10] sm:$0xff] }
  0x74   :  { %572 = vmatpush.msrb.mxu0 %v226_v38  ;;  %591 = vmatpush.msrb.mxu1 %v243_v39  ;;  %v265_v17 = vld [vmem:[%s1593_s1 + $0x780] sm:$0xff]  ;;  %v649_v29 = vld [vmem:[%s1595_s3 + $0x18] sm:$0xff]  ;;  %v647_v33 = vld [vmem:[%s1595_s3 + $0x8] sm:$0xff] }
  0x75   :  { %612 = vmatpush.msrb.mxu2 %v258_v40  ;;  %631 = vmatpush.msrb.mxu3 %v275_v41  ;;  %v710_v20 = vld [vmem:[%s1594_s2] ss:$0 sm:$0xff] }
  0x76   :  { %573 = vmatpush.msrb.mxu0 %v225_v42  ;;  %592 = vmatpush.msrb.mxu1 %v242_v43  ;;  %v646_v35 = vld [vmem:[%s1595_s3] sm:$0xff] }
  0x77   :  { %613 = vmatpush.msrb.mxu2 %v257_v44  ;;  %632 = vmatpush.msrb.mxu3 %v274_v45 }
  0x78   :  { %574 = vmatpush.msrb.mxu0 %v224_v46  ;;  %593 = vmatpush.msrb.mxu1 %v241_v47 }
  0x79   :  { %614 = vmatpush.msrb.mxu2 %v256_v48  ;;  %633 = vmatpush.msrb.mxu3 %v273_v49 }
  0x7a   :  { %575 = vmatpush.msrb.mxu0 %v223_v50  ;;  %594 = vmatpush.msrb.mxu1 %v240_v51 }
  0x7b   :  { %615 = vmatpush.msrb.mxu2 %v255_v52  ;;  %634 = vmatpush.msrb.mxu3 %v272_v53 }
  0x7c   :  { %576 = vmatpush.msrb.mxu0 %v222_v54  ;;  %595 = vmatpush.msrb.mxu1 %v239_v55 }
  0x7d   :  { %616 = vmatpush.msrb.mxu2 %v254_v56  ;;  %635 = vmatpush.msrb.mxu3 %v271_v57  ;;  %v711_v57 = vld [vmem:[%s1596_s4] ss:$0 sm:$0xff]  ;;  %s699_s4 = sshll.u32 %s1597_s5, 4  ;;  %s700_s4 = int_to_ptr.hbm [resolvable:$true] %s699_s4 }
  0x7e   :  { %577 = vmatpush.msrb.mxu0 %v221_v58  ;;  %596 = vmatpush.msrb.mxu1 %v238_v59 }
  0x7f   :  { %617 = vmatpush.msrb.mxu2 %v253_v60  ;;  %636 = vmatpush.msrb.mxu3 %v270_v61 }
  0x80   :  { %578 = vmatpush.msrb.mxu0 %v220_v62  ;;  %597 = vmatpush.msrb.mxu1 %v237_v63 }
  0x81   :  { %618 = vmatpush.msrb.mxu2 %v252_v0  ;;  %637 = vmatpush.msrb.mxu3 %v269_v1 }
  0x82   :  { %579 = vmatpush.msrb.mxu0 %v219_v2  ;;  %598 = vmatpush.msrb.mxu1 %v236_v3 }
  0x83   :  { %619 = vmatpush.msrb.mxu2 %v251_v4  ;;  %638 = vmatpush.msrb.mxu3 %v268_v5 }
  0x84   :  { %580 = vmatpush.msrb.mxu0 %v218_v6  ;;  %599 = vmatpush.msrb.mxu1 %v235_v7 }
  0x85   :  { %620 = vmatpush.msrb.mxu2 %v250_v8  ;;  %639 = vmatpush.msrb.mxu3 %v267_v9 }
  0x86   :  { %581 = vmatpush.msrb.mxu0 %v217_v10  ;;  %600 = vmatpush.msrb.mxu1 %v234_v11 }
  0x87   :  { %621 = vmatpush.msrb.mxu2 %v249_v12  ;;  %640 = vmatpush.msrb.mxu3 %v266_v13 }
  0x88   :  { %582 = vmatmul.f32.vlgmr.msrb.gmra.mxu0 %v306_v14  ;;  %622 = vmatmul.f32.vlgmr.msrb.gmra.mxu2 %v308_v15 }
  0x89   :  { %601 = vmatpush.msrb.mxu1 %v233_v16  ;;  %641 = vmatpush.msrb.mxu3 %v265_v17 }
  0x8a   :  { %602 = vmatmul.f32.vlgmr.msrb.gmra.mxu1 %v307_v18  ;;  %642 = vmatmul.f32.vlgmr.msrb.gmra.mxu3 %v309_v19 }
  0x8b   :  { %670 = vmatpush.msra.mxu0 %v649_v29 }
  0x8d   :  { %671 = vmatpush.msra.mxu0 %v648_v30 }
  0x8f   :  { %672 = vmatpush.msra.mxu0 %v647_v33 }
  0x91   :  { %673 = vmatpush.msra.mxu0 %v646_v35 }
  0xbf   :  { %v343_v21 = vpop.f32.mrf.mxu0 }
  0xc0   :  { %v344_v22 = vadd.f32 %v710_v20, %v343_v21 }
  0xc2   :  { %v363_v23 = vpop.f32.mrf.mxu1 }
  0xc3   :  { %v364_v24 = vadd.f32 %v363_v23, %v344_v22 }
  0xc5   :  { %v383_v25 = vpop.f32.mrf.mxu2 }
  0xc6   :  { %v384_v26 = vadd.f32 %v383_v25, %v364_v24 }
  0xc8   :  { %v403_v27 = vpop.f32.mrf.mxu3 }
  0xc9   :  { %v404_v28 = vadd.f32 %v403_v27, %v384_v26 }
  0xcb   :  { %v423_v31 = vpop.f32.mrf.mxu0 }
  0xcc   :  { %v424_v32 = vadd.f32 %v423_v31, %v404_v28 }
  0xce   :  { %v443_v34 = vpop.f32.mrf.mxu1 }
  0xcf   :  { %v444_v36 = vadd.f32 %v443_v34, %v424_v32  ;;  %v463_v37 = vpop.f32.mrf.mxu2 }
  0xd1   :  { %v464_v38 = vadd.f32 %v463_v37, %v444_v36 }
  0xd2   :  { %v483_v39 = vpop.f32.mrf.mxu3 }
  0xd3   :  { %v484_v41 = vadd.f32 %v483_v39, %v464_v38 }
  0xe3   :  { %v503_v40 = vpop.f32.mrf.mxu0 }
  0xe4   :  { %v504_v42 = vadd.f32 %v503_v40, %v484_v41 }
  0xe6   :  { %v523_v43 = vpop.f32.mrf.mxu1 }
  0xe7   :  { %v524_v45 = vadd.f32 %v523_v43, %v504_v42 }
  0xe9   :  { %v543_v44 = vpop.f32.mrf.mxu2 }
  0xea   :  { %v544_v46 = vadd.f32 %v543_v44, %v524_v45 }
  0xec   :  { %v563_v47 = vpop.f32.mrf.mxu3 }
  0xed   :  { %v564_v48 = vadd.f32 %v563_v47, %v544_v46 }
 0x105   :  { %v583_v49 = vpop.f32.mrf.mxu0 }
 0x106   :  { %v584_v50 = vadd.f32 %v583_v49, %v564_v48 }
 0x107   :  { %v603_v51 = vpop.f32.mrf.mxu1 }
 0x108   :  { %v604_v52 = vadd.f32 %v603_v51, %v584_v50 }
 0x10b   :  { %v623_v53 = vpop.f32.mrf.mxu2 }
 0x10c   :  { %v624_v54 = vadd.f32 %v623_v53, %v604_v52 }
 0x10d   :  { %v643_v55 = vpop.f32.mrf.mxu3 }
 0x10e   :  { %v644_v56 = vadd.f32 %v643_v55, %v624_v54 }
 0x110   :  { %708 = vmatmul.msk.f32.vlgmr.msra.gmra.mxu0 %vm654_vm0, %v644_v56 }
 0x18d   :  { %v675_v58 = vpop.f32.mrf.mxu0 }
 0x18e   :  { %v676_v59 = vadd.f32 %v711_v57, %v675_v58 }
 0x190   :  { %v679_v60 = vsel %vm678_vm1, %v676_v59, -inf }
 0x191   :  { %680 = vmax.xlane.f32.xlu0 %v679_v60 }
 0x204   :  { %v681_v61 = vpop.xlane.xlu0 %680 }
 0x205   :  { %v682_v62 = vsub.f32 %v676_v59, %v681_v61 }
 0x207   :  { %v683_v63 = vmul.f32 1.442695, %v682_v62 }
 0x209   :  { %712 = vpow2.f32 %v683_v63 }
 0x20f   :  { %v713_v0 = vpop.eup %712 }
 0x210   :  { %v685_v1 = vsel %vm678_vm1, %v713_v0, 0.0 }
 0x211   :  { %686 = vadd.xlane.f32.xlu0 %v685_v1 }
 0x284   :  { %v687_v2 = vpop.xlane.xlu0 %686 }
 0x285   :  { %714 = vlog2.f32 %v687_v2 }
 0x28b   :  { %v715_v3 = vpop.eup %714 }
 0x28c   :  { %v689_v4 = vmul.f32 0.6931472, %v715_v3 }
 0x28e   :  { %v690_v5 = vsub.f32 %v682_v62, %v689_v4 }
 0x290   :  { %691 = vst [vmem:[#allocation2] sm:$0x3] %v690_v5 }
 0x291   :  { %702 = dma.vmem_to_hbm [thread:$0]  %s698_s12, 32, %s700_s4, [#allocation3]  }
 0x292   :  { %740 = dma.done.wait [#allocation3], 32  }
 0x293   :  { %741 = vsyncadd [#allocation3], 4294967264 }
 0x294   :  { %707 = vsyncpa [#allocation3], 1 }

</bundles_post_ra>
